<compile_context>
chip_gen: v6e
topology: v6e:2x2x1
jax: 0.10.0
libtpu: 0.0.40
codegen_flags: <defaults>
</compile_context>

<pallas_src>
import numpy as np
import jax
import jax.numpy as jnp
from jax.experimental import pallas as pl
from jax.experimental.pallas import tpu as pltpu


def _round_up(x, m):
    return (x + m - 1) // m * m


# ------------------------------ Pallas kernel ------------------------------ #
def _mlp3_kernel(x_ref, w1_ref, b1_ref, w2_ref, b2_ref, w3_ref, b3_ref, o_ref):
    # x: (tm, K) f32 ; w*: bf16 (K,H)/(H,H)/(H,Npad) ; b*: (1, .) f32
    x = x_ref[...].astype(jnp.bfloat16)
    h = jnp.dot(x, w1_ref[...], preferred_element_type=jnp.float32)
    h = jnp.maximum(h + b1_ref[...], 0.0)                       # f32 epilogue
    h = jnp.dot(h.astype(jnp.bfloat16), w2_ref[...],
                preferred_element_type=jnp.float32)
    h = jnp.maximum(h + b2_ref[...], 0.0)
    out = jnp.dot(h.astype(jnp.bfloat16), w3_ref[...],
                  preferred_element_type=jnp.float32) + b3_ref[...]
    o_ref[...] = out.astype(o_ref.dtype)


def fused_mlp3(x, w1t, b1, w2t, b2, w3t, b3, *, tile_m=512,
               single_buffer_weights=True):
    """relu(relu(x@w1t+b1)@w2t+b2)@w3t+b3 fused in one pallas_call.

    x: (M, K) f32; w1t/w2t/w3t: (K,H)/(H,H)/(H,Npad) bf16; biases (1, .) f32.
    Returns (M, Npad) f32 — caller slices off the channel padding.
    """
    M, K = x.shape
    H = w1t.shape[1]
    Npad = w3t.shape[1]

    # Pad rows only to the 8-sublane requirement (no round-up to the M tile).
    Mpad = _round_up(M, 8)
    if Mpad != M:
        x = jnp.pad(x, ((0, Mpad - M), (0, 0)))

    tm = min(_round_up(tile_m, 8), Mpad)
    if Mpad > 8:
        # Keep >= 2 grid steps so v7x's second TensorCore can take half the rows.
        tm = min(tm, _round_up(pl.cdiv(Mpad, 2), 8))
    grid = (pl.cdiv(Mpad, tm),)

    # Grid-invariant operands: request single buffering (no 2x VMEM copies).
    wkwargs = dict(pipeline_mode=pl.Buffered(1)) if single_buffer_weights else {}

    def const_spec(shape):
        return pl.BlockSpec(shape, lambda i: (0, 0), **wkwargs)

    weight_bytes = 2 * (K * H + H * H + H * Npad) + 4 * (2 * H + Npad)
    stream_bytes = 2 * 4 * (tm * K + tm * Npad)        # double-buffered x / out
    scratch_bytes = 3 * 4 * tm * max(H, Npad)          # activation headroom
    vmem_limit = int(1.5 * (weight_bytes + stream_bytes + scratch_bytes))
    vmem_limit = min(max(vmem_limit, 16 << 20), 64 << 20)

    flops = 2 * Mpad * (K * H + H * H + H * Npad)
    bytes_accessed = weight_bytes + 4 * Mpad * (K + Npad)

    out = pl.pallas_call(
        _mlp3_kernel,
        out_shape=jax.ShapeDtypeStruct((Mpad, Npad), jnp.float32),
        grid=grid,
        in_specs=[
            pl.BlockSpec((tm, K), lambda i: (i, 0)),   # x tile (streamed)
            const_spec((K, H)),                        # w1 (resident, bf16)
            const_spec((1, H)),                        # b1 (f32)
            const_spec((H, H)),                        # w2
            const_spec((1, H)),                        # b2
            const_spec((H, Npad)),                     # w3 (lane-dense padded)
            const_spec((1, Npad)),                     # b3
        ],
        out_specs=pl.BlockSpec((tm, Npad), lambda i: (i, 0)),
        compiler_params=pltpu.CompilerParams(
            dimension_semantics=("parallel",),
            vmem_limit_bytes=vmem_limit),
        cost_estimate=pl.CostEstimate(
            flops=flops, transcendentals=0, bytes_accessed=bytes_accessed),
    )(x, w1t, b1, w2t, b2, w3t, b3)
    return out[:M]


# --------------------------------- Module ---------------------------------- #
class ImpossiblyGoodDecoderHeadPallas:
    """JAX/Pallas port of the PyTorch ImpossiblyGoodDecoderHead."""

    def __init__(self, out_channels, in_channels=512, hidden_channels=512, key=None):
        if key is None:
            key = jax.random.PRNGKey(0)
        ks = jax.random.split(key, 6)

        def uinit(k, shape, fan_in):  # PyTorch default U(-1/sqrt(fan_in), 1/sqrt(fan_in))
            bound = 1.0 / np.sqrt(fan_in)
            return jax.random.uniform(k, shape, jnp.float32, -bound, bound)

        # PyTorch nn.Linear stores weight as (out, in); computes x @ W.T + b.
        w1 = uinit(ks[0], (hidden_channels, in_channels), in_channels)
        b1 = uinit(ks[1], (hidden_channels,), in_channels)
        w2 = uinit(ks[2], (hidden_channels, hidden_channels), hidden_channels)
        b2 = uinit(ks[3], (hidden_channels,), hidden_channels)
        w3 = uinit(ks[4], (out_channels, hidden_channels), hidden_channels)
        b3 = uinit(ks[5], (out_channels,), hidden_channels)

        self.out_channels = out_channels
        self.in_channels = in_channels
        npad = _round_up(out_channels, 128)  # lane-dense final-layer width

        # Pre-transpose once; weights -> bf16 (MXU inputs), biases stay f32.
        self.w1t = w1.T.astype(jnp.bfloat16)
        self.b1 = b1.reshape(1, -1)
        self.w2t = w2.T.astype(jnp.bfloat16)
        self.b2 = b2.reshape(1, -1)
        w3t_pad = jnp.zeros((hidden_channels, npad), jnp.float32)
        w3t_pad = w3t_pad.at[:, :out_channels].set(w3.T)
        self.w3t = w3t_pad.astype(jnp.bfloat16)
        self.b3 = jnp.zeros((1, npad), jnp.float32).at[:, :out_channels].set(b3)

        # Probe: fall back to default double-buffered weight specs if this
        # JAX build rejects pipeline_mode=pl.Buffered(1) inside pallas_call.
        self._single_buffer_weights = True
        try:
            probe = jnp.zeros((8, in_channels), jnp.float32)
            jax.block_until_ready(self._forward_impl(probe))
        except Exception:
            self._single_buffer_weights = False

        self._forward = jax.jit(self._forward_impl)

    def _forward_impl(self, x):
        out = fused_mlp3(x, self.w1t, self.b1, self.w2t, self.b2,
                         self.w3t, self.b3,
                         single_buffer_weights=self._single_buffer_weights)
        return out[:, :self.out_channels]

    def __call__(self, x):
        return self._forward(x)


def reference_forward(m, x):
    """Pure-JAX reference mirroring the kernel numerics (bf16 MXU inputs,
    f32 accumulation and epilogue), matching the PyTorch forward structure."""
    bf = jnp.bfloat16
    h = jnp.maximum(
        jnp.dot(x.astype(bf), m.w1t, preferred_element_type=jnp.float32) + m.b1, 0.0)
    h = jnp.maximum(
        jnp.dot(h.astype(bf), m.w2t, preferred_element_type=jnp.float32) + m.b2, 0.0)
    out = jnp.dot(h.astype(bf), m.w3t, preferred_element_type=jnp.float32) + m.b3
    return out[:, :m.out_channels]


if __name__ == "__main__":
    key = jax.random.PRNGKey(0)
    k_param, k_in = jax.random.split(key)

    B, IN, HID, OUT = 2, 512, 512, 7   # module defaults: in=512, hidden=512
    model = ImpossiblyGoodDecoderHeadPallas(
        OUT, in_channels=IN, hidden_channels=HID, key=k_param)
    x = jax.random.normal(k_in, (B, IN), dtype=jnp.float32)

    out = jax.block_until_ready(model(x))
    ref = jax.block_until_ready(reference_forward(model, x))

    assert out.shape == (B, OUT), out.shape
    np.testing.assert_allclose(np.asarray(out), np.asarray(ref), rtol=2e-3, atol=2e-3)
    print("KERNEL_OK")
</pallas_src>

<mosaic_0001>
module attributes {stable_mosaic.version = 11 : i64} {
  func.func @_mlp3_kernel(%arg0: i32, %arg1: memref<8x512xf32, #tpu.memory_space<vmem>>, %arg2: memref<512x512xbf16, #tpu.memory_space<vmem>>, %arg3: memref<1x512xf32, #tpu.memory_space<vmem>>, %arg4: memref<512x512xbf16, #tpu.memory_space<vmem>>, %arg5: memref<1x512xf32, #tpu.memory_space<vmem>>, %arg6: memref<512x128xbf16, #tpu.memory_space<vmem>>, %arg7: memref<1x128xf32, #tpu.memory_space<vmem>>, %arg8: memref<8x128xf32, #tpu.memory_space<vmem>>) attributes {dimension_semantics = [#tpu.dimension_semantics<parallel>], iteration_bounds = array<i64: 1>, scalar_prefetch = 0 : i64, scratch_operands = 0 : i64, tpu.core_type = #tpu.core_type<tc>, window_params = [{transform_indices = @transform_0, window_bounds = array<i64: 8, 512>}, {pipeline_mode = #tpu.pipeline_mode<synchronous>, transform_indices = @transform_1, window_bounds = array<i64: 512, 512>}, {pipeline_mode = #tpu.pipeline_mode<synchronous>, transform_indices = @transform_2, window_bounds = array<i64: 1, 512>}, {pipeline_mode = #tpu.pipeline_mode<synchronous>, transform_indices = @transform_3, window_bounds = array<i64: 512, 512>}, {pipeline_mode = #tpu.pipeline_mode<synchronous>, transform_indices = @transform_4, window_bounds = array<i64: 1, 512>}, {pipeline_mode = #tpu.pipeline_mode<synchronous>, transform_indices = @transform_5, window_bounds = array<i64: 512, 128>}, {pipeline_mode = #tpu.pipeline_mode<synchronous>, transform_indices = @transform_6, window_bounds = array<i64: 1, 128>}, {transform_indices = @transform_7, window_bounds = array<i64: 8, 128>}]} {
    %c0 = arith.constant 0 : index
    %c0_0 = arith.constant 0 : index
    %0 = vector.load %arg1[%c0, %c0_0] : memref<8x512xf32, #tpu.memory_space<vmem>>, vector<8x512xf32>
    %1 = arith.truncf %0 : vector<8x512xf32> to vector<8x512xbf16>
    %c0_1 = arith.constant 0 : index
    %c0_2 = arith.constant 0 : index
    %2 = vector.load %arg2[%c0_1, %c0_2] : memref<512x512xbf16, #tpu.memory_space<vmem>>, vector<512x512xbf16>
    %cst = arith.constant dense<0.000000e+00> : vector<8x512xf32>
    %3 = tpu.matmul %1, %2, %cst {dimension_numbers = #tpu.dot_dimension_numbers<[1], [0], [0], [1], [0, 0, 1, 1], [], []>} : vector<8x512xbf16>, vector<512x512xbf16>, vector<8x512xf32> -> vector<8x512xf32>
    %c0_3 = arith.constant 0 : index
    %c0_4 = arith.constant 0 : index
    %4 = vector.load %arg3[%c0_3, %c0_4] : memref<1x512xf32, #tpu.memory_space<vmem>>, vector<1x512xf32>
    %5 = vector.broadcast %4 : vector<1x512xf32> to vector<8x512xf32>
    %6 = arith.addf %3, %5 : vector<8x512xf32>
    %cst_5 = arith.constant 0.000000e+00 : f32
    %7 = vector.broadcast %cst_5 : f32 to vector<8x512xf32>
    %8 = arith.maximumf %6, %7 : vector<8x512xf32>
    %9 = arith.truncf %8 : vector<8x512xf32> to vector<8x512xbf16>
    %c0_6 = arith.constant 0 : index
    %c0_7 = arith.constant 0 : index
    %10 = vector.load %arg4[%c0_6, %c0_7] : memref<512x512xbf16, #tpu.memory_space<vmem>>, vector<512x512xbf16>
    %cst_8 = arith.constant dense<0.000000e+00> : vector<8x512xf32>
    %11 = tpu.matmul %9, %10, %cst_8 {dimension_numbers = #tpu.dot_dimension_numbers<[1], [0], [0], [1], [0, 0, 1, 1], [], []>} : vector<8x512xbf16>, vector<512x512xbf16>, vector<8x512xf32> -> vector<8x512xf32>
    %c0_9 = arith.constant 0 : index
    %c0_10 = arith.constant 0 : index
    %12 = vector.load %arg5[%c0_9, %c0_10] : memref<1x512xf32, #tpu.memory_space<vmem>>, vector<1x512xf32>
    %13 = vector.broadcast %12 : vector<1x512xf32> to vector<8x512xf32>
    %14 = arith.addf %11, %13 : vector<8x512xf32>
    %cst_11 = arith.constant 0.000000e+00 : f32
    %15 = vector.broadcast %cst_11 : f32 to vector<8x512xf32>
    %16 = arith.maximumf %14, %15 : vector<8x512xf32>
    %17 = arith.truncf %16 : vector<8x512xf32> to vector<8x512xbf16>
    %c0_12 = arith.constant 0 : index
    %c0_13 = arith.constant 0 : index
    %18 = vector.load %arg6[%c0_12, %c0_13] : memref<512x128xbf16, #tpu.memory_space<vmem>>, vector<512x128xbf16>
    %cst_14 = arith.constant dense<0.000000e+00> : vector<8x128xf32>
    %19 = tpu.matmul %17, %18, %cst_14 {dimension_numbers = #tpu.dot_dimension_numbers<[1], [0], [0], [1], [0, 0, 1, 1], [], []>} : vector<8x512xbf16>, vector<512x128xbf16>, vector<8x128xf32> -> vector<8x128xf32>
    %c0_15 = arith.constant 0 : index
    %c0_16 = arith.constant 0 : index
    %20 = vector.load %arg7[%c0_15, %c0_16] : memref<1x128xf32, #tpu.memory_space<vmem>>, vector<1x128xf32>
    %21 = vector.broadcast %20 : vector<1x128xf32> to vector<8x128xf32>
    %22 = arith.addf %19, %21 : vector<8x128xf32>
    %c0_17 = arith.constant 0 : index
    %c0_18 = arith.constant 0 : index
    %23 = vector.load %arg8[%c0_17, %c0_18] : memref<8x128xf32, #tpu.memory_space<vmem>>, vector<8x128xf32>
    tpu.vector_store %arg8[%c0_17, %c0_18], %22 {strides = array<i32>} : memref<8x128xf32, #tpu.memory_space<vmem>>, vector<8x128xf32>,
    return
  }
  func.func @transform_0(%arg0: i32) -> (i32, i32) {
    %c0_i32 = arith.constant 0 : i32
    %c0_i32_0 = arith.constant 0 : i32
    return %arg0, %c0_i32 : i32, i32
  }
  func.func @transform_1(%arg0: i32) -> (i32, i32) {
    %c0_i32 = arith.constant 0 : i32
    %c0_i32_0 = arith.constant 0 : i32
    %c0_i32_1 = arith.constant 0 : i32
    return %c0_i32, %c0_i32_0 : i32, i32
  }
  func.func @transform_2(%arg0: i32) -> (i32, i32) {
    %c0_i32 = arith.constant 0 : i32
    %c0_i32_0 = arith.constant 0 : i32
    %c0_i32_1 = arith.constant 0 : i32
    return %c0_i32, %c0_i32_0 : i32, i32
  }
  func.func @transform_3(%arg0: i32) -> (i32, i32) {
    %c0_i32 = arith.constant 0 : i32
    %c0_i32_0 = arith.constant 0 : i32
    %c0_i32_1 = arith.constant 0 : i32
    return %c0_i32, %c0_i32_0 : i32, i32
  }
  func.func @transform_4(%arg0: i32) -> (i32, i32) {
    %c0_i32 = arith.constant 0 : i32
    %c0_i32_0 = arith.constant 0 : i32
    %c0_i32_1 = arith.constant 0 : i32
    return %c0_i32, %c0_i32_0 : i32, i32
  }
  func.func @transform_5(%arg0: i32) -> (i32, i32) {
    %c0_i32 = arith.constant 0 : i32
    %c0_i32_0 = arith.constant 0 : i32
    %c0_i32_1 = arith.constant 0 : i32
    return %c0_i32, %c0_i32_0 : i32, i32
  }
  func.func @transform_6(%arg0: i32) -> (i32, i32) {
    %c0_i32 = arith.constant 0 : i32
    %c0_i32_0 = arith.constant 0 : i32
    %c0_i32_1 = arith.constant 0 : i32
    return %c0_i32, %c0_i32_0 : i32, i32
  }
  func.func @transform_7(%arg0: i32) -> (i32, i32) {
    %c0_i32 = arith.constant 0 : i32
    %c0_i32_0 = arith.constant 0 : i32
    return %arg0, %c0_i32 : i32, i32
  }
}

module attributes {stable_mosaic.version = 11 : i64} {
  func.func @_mlp3_kernel(%arg0: i32, %arg1: memref<8x512xf32, #tpu.memory_space<vmem>>, %arg2: memref<512x512xbf16, #tpu.memory_space<vmem>>, %arg3: memref<1x512xf32, #tpu.memory_space<vmem>>, %arg4: memref<512x512xbf16, #tpu.memory_space<vmem>>, %arg5: memref<1x512xf32, #tpu.memory_space<vmem>>, %arg6: memref<512x128xbf16, #tpu.memory_space<vmem>>, %arg7: memref<1x128xf32, #tpu.memory_space<vmem>>, %arg8: memref<8x128xf32, #tpu.memory_space<vmem>>) attributes {dimension_semantics = [#tpu.dimension_semantics<parallel>], iteration_bounds = array<i64: 1>, scalar_prefetch = 0 : i64, scratch_operands = 0 : i64, tpu.core_type = #tpu.core_type<tc>, window_params = [{transform_indices = @transform_0, window_bounds = array<i64: 8, 512>}, {pipeline_mode = #tpu.pipeline_mode<synchronous>, transform_indices = @transform_1, window_bounds = array<i64: 512, 512>}, {pipeline_mode = #tpu.pipeline_mode<synchronous>, transform_indices = @transform_2, window_bounds = array<i64: 1, 512>}, {pipeline_mode = #tpu.pipeline_mode<synchronous>, transform_indices = @transform_3, window_bounds = array<i64: 512, 512>}, {pipeline_mode = #tpu.pipeline_mode<synchronous>, transform_indices = @transform_4, window_bounds = array<i64: 1, 512>}, {pipeline_mode = #tpu.pipeline_mode<synchronous>, transform_indices = @transform_5, window_bounds = array<i64: 512, 128>}, {pipeline_mode = #tpu.pipeline_mode<synchronous>, transform_indices = @transform_6, window_bounds = array<i64: 1, 128>}, {transform_indices = @transform_7, window_bounds = array<i64: 8, 128>}]} {
    %c0 = arith.constant 0 : index
    %c0_0 = arith.constant 0 : index
    %0 = vector.load %arg1[%c0, %c0_0] : memref<8x512xf32, #tpu.memory_space<vmem>>, vector<8x512xf32>
    %1 = arith.truncf %0 : vector<8x512xf32> to vector<8x512xbf16>
    %c0_1 = arith.constant 0 : index
    %c0_2 = arith.constant 0 : index
    %2 = vector.load %arg2[%c0_1, %c0_2] : memref<512x512xbf16, #tpu.memory_space<vmem>>, vector<512x512xbf16>
    %cst = arith.constant dense<0.000000e+00> : vector<8x512xf32>
    %3 = tpu.matmul %1, %2, %cst {dimension_numbers = #tpu.dot_dimension_numbers<[1], [0], [0], [1], [0, 0, 1, 1], [], []>} : vector<8x512xbf16>, vector<512x512xbf16>, vector<8x512xf32> -> vector<8x512xf32>
    %c0_3 = arith.constant 0 : index
    %c0_4 = arith.constant 0 : index
    %4 = vector.load %arg3[%c0_3, %c0_4] : memref<1x512xf32, #tpu.memory_space<vmem>>, vector<1x512xf32>
    %5 = vector.broadcast %4 : vector<1x512xf32> to vector<8x512xf32>
    %6 = arith.addf %3, %5 : vector<8x512xf32>
    %cst_5 = arith.constant 0.000000e+00 : f32
    %7 = vector.broadcast %cst_5 : f32 to vector<8x512xf32>
    %8 = arith.maximumf %6, %7 : vector<8x512xf32>
    %9 = arith.truncf %8 : vector<8x512xf32> to vector<8x512xbf16>
    %c0_6 = arith.constant 0 : index
    %c0_7 = arith.constant 0 : index
    %10 = vector.load %arg4[%c0_6, %c0_7] : memref<512x512xbf16, #tpu.memory_space<vmem>>, vector<512x512xbf16>
    %cst_8 = arith.constant dense<0.000000e+00> : vector<8x512xf32>
    %11 = tpu.matmul %9, %10, %cst_8 {dimension_numbers = #tpu.dot_dimension_numbers<[1], [0], [0], [1], [0, 0, 1, 1], [], []>} : vector<8x512xbf16>, vector<512x512xbf16>, vector<8x512xf32> -> vector<8x512xf32>
    %c0_9 = arith.constant 0 : index
    %c0_10 = arith.constant 0 : index
    %12 = vector.load %arg5[%c0_9, %c0_10] : memref<1x512xf32, #tpu.memory_space<vmem>>, vector<1x512xf32>
    %13 = vector.broadcast %12 : vector<1x512xf32> to vector<8x512xf32>
    %14 = arith.addf %11, %13 : vector<8x512xf32>
    %cst_11 = arith.constant 0.000000e+00 : f32
    %15 = vector.broadcast %cst_11 : f32 to vector<8x512xf32>
    %16 = arith.maximumf %14, %15 : vector<8x512xf32>
    %17 = arith.truncf %16 : vector<8x512xf32> to vector<8x512xbf16>
    %c0_12 = arith.constant 0 : index
    %c0_13 = arith.constant 0 : index
    %18 = vector.load %arg6[%c0_12, %c0_13] : memref<512x128xbf16, #tpu.memory_space<vmem>>, vector<512x128xbf16>
    %cst_14 = arith.constant dense<0.000000e+00> : vector<8x128xf32>
    %19 = tpu.matmul %17, %18, %cst_14 {dimension_numbers = #tpu.dot_dimension_numbers<[1], [0], [0], [1], [0, 0, 1, 1], [], []>} : vector<8x512xbf16>, vector<512x128xbf16>, vector<8x128xf32> -> vector<8x128xf32>
    %c0_15 = arith.constant 0 : index
    %c0_16 = arith.constant 0 : index
    %20 = vector.load %arg7[%c0_15, %c0_16] : memref<1x128xf32, #tpu.memory_space<vmem>>, vector<1x128xf32>
    %21 = vector.broadcast %20 : vector<1x128xf32> to vector<8x128xf32>
    %22 = arith.addf %19, %21 : vector<8x128xf32>
    %c0_17 = arith.constant 0 : index
    %c0_18 = arith.constant 0 : index
    %23 = vector.load %arg8[%c0_17, %c0_18] : memref<8x128xf32, #tpu.memory_space<vmem>>, vector<8x128xf32>
    tpu.vector_store %arg8[%c0_17, %c0_18], %22 {strides = array<i32>} : memref<8x128xf32, #tpu.memory_space<vmem>>, vector<8x128xf32>,
    return
  }
  func.func @transform_0(%arg0: i32) -> (i32, i32) {
    %c0_i32 = arith.constant 0 : i32
    %c0_i32_0 = arith.constant 0 : i32
    return %arg0, %c0_i32 : i32, i32
  }
  func.func @transform_1(%arg0: i32) -> (i32, i32) {
    %c0_i32 = arith.constant 0 : i32
    %c0_i32_0 = arith.constant 0 : i32
    %c0_i32_1 = arith.constant 0 : i32
    return %c0_i32, %c0_i32_0 : i32, i32
  }
  func.func @transform_2(%arg0: i32) -> (i32, i32) {
    %c0_i32 = arith.constant 0 : i32
    %c0_i32_0 = arith.constant 0 : i32
    %c0_i32_1 = arith.constant 0 : i32
    return %c0_i32, %c0_i32_0 : i32, i32
  }
  func.func @transform_3(%arg0: i32) -> (i32, i32) {
    %c0_i32 = arith.constant 0 : i32
    %c0_i32_0 = arith.constant 0 : i32
    %c0_i32_1 = arith.constant 0 : i32
    return %c0_i32, %c0_i32_0 : i32, i32
  }
  func.func @transform_4(%arg0: i32) -> (i32, i32) {
    %c0_i32 = arith.constant 0 : i32
    %c0_i32_0 = arith.constant 0 : i32
    %c0_i32_1 = arith.constant 0 : i32
    return %c0_i32, %c0_i32_0 : i32, i32
  }
  func.func @transform_5(%arg0: i32) -> (i32, i32) {
    %c0_i32 = arith.constant 0 : i32
    %c0_i32_0 = arith.constant 0 : i32
    %c0_i32_1 = arith.constant 0 : i32
    return %c0_i32, %c0_i32_0 : i32, i32
  }
  func.func @transform_6(%arg0: i32) -> (i32, i32) {
    %c0_i32 = arith.constant 0 : i32
    %c0_i32_0 = arith.constant 0 : i32
    %c0_i32_1 = arith.constant 0 : i32
    return %c0_i32, %c0_i32_0 : i32, i32
  }
  func.func @transform_7(%arg0: i32) -> (i32, i32) {
    %c0_i32 = arith.constant 0 : i32
    %c0_i32_0 = arith.constant 0 : i32
    return %arg0, %c0_i32 : i32, i32
  }
}

</mosaic_0001>

<bundles_post_ra>
// kernel: tpu_custom_call.1
= control target key start
LH: loop header
LB: loop body
LE: loop exit
PB: predicated region body
PF: predicated region fallthrough
CT: control target
= control target key end

     0   :  { %12 = vsyncpa [#allocation3], 0  ;;  %s3394_s0 = inlined_call_operand.hbm [shape: f32[8,512], index: 0, kind: input, shape index: {}]   ;;  %s3395_s1 = inlined_call_operand.hbm [shape: bf16[512,512], index: 1, kind: input, shape index: {}]   ;;  %s3396_s2 = inlined_call_operand.hbm [shape: f32[1,512], index: 2, kind: input, shape index: {}]   ;;  %s3397_s3 = inlined_call_operand.hbm [shape: bf16[512,512], index: 3, kind: input, shape index: {}]   ;;  %s3398_s4 = inlined_call_operand.vmem [shape: f32[1,512], index: 4, kind: input, shape index: {}]   ;;  %s3399_s5 = inlined_call_operand.hbm [shape: bf16[512,128], index: 5, kind: input, shape index: {}]   ;;  %s3400_s6 = inlined_call_operand.vmem [shape: f32[1,128], index: 6, kind: input, shape index: {}]   ;;  %s3401_s7 = inlined_call_operand.hbm [shape: f32[8,128], index: 7, kind: output, shape index: {}]  }
   0x1   :  { %13 = vsyncpa [#allocation6], 0 }
   0x2   :  { %14 = vsyncpa [#allocation9], 0 }
   0x3   :  { %15 = vsyncpa [#allocation4], 0  ;;  %s3272_s24 = smov [#allocation5]  }
   0x4   :  { %s31_s25 = sshll.u32 %s3272_s24, 4  ;;  %s32_s25 = int_to_ptr.vmem [resolvable:$true] %s31_s25 }
   0x5   :  { %s3152_s26 = scalar_lea.vmem %s32_s25, 16384  ;;  %p3157_p1 = scmp.lt.s32.totalorder %s32_s25, %s32_s25 }
   0x6   :  { %p3153_p0 = scmp.ne.s32.totalorder %s32_s25, %s3152_s26  ;;  %p3158_p2 = scmp.lt.s32.totalorder %s3152_s26, %s3152_s26 }
   0x8   :  { %p3159_p3 = por %p3158_p2, %p3157_p1 }
   0xa   :  { %p3160_p4 = pnand %p3159_p3, %p3153_p0 }
   0xc   :  { %3163 = shalt.err (!%p3160_p4)
}
   0xd   :  { %s3273_s27 = smov 256   ;;  %s3274_s28 = smov 16  }
   0xe   :  { %37 = dma.hbm_to_vmem [thread:$0]  %s3395_s1, 16384, %s32_s25, [#allocation6], %s3273_s27, %s3273_s27, %s3274_s28  }
   0xf   :  { %s3275_s8 = smov [#allocation8]   ;;  %s3276_s10 = smov [#allocation2]  }
  0x10   :  { %s53_s9 = sshll.u32 %s3275_s8, 4  ;;  %s22_s11 = sshll.u32 %s3276_s10, 4  ;;  %s54_s9 = int_to_ptr.vmem [resolvable:$true] %s53_s9  ;;  %s23_s11 = int_to_ptr.vmem [resolvable:$true] %s22_s11 }
  0x11   :  { %s3172_s12 = scalar_lea.vmem %s54_s9, 16384  ;;  %p3177_p6 = scmp.lt.s32.totalorder %s54_s9, %s54_s9 }
  0x12   :  { %p3173_p5 = scmp.ne.s32.totalorder %s54_s9, %s3172_s12  ;;  %p3178_p7 = scmp.lt.s32.totalorder %s3172_s12, %s3172_s12 }
  0x14   :  { %p3179_p8 = por %p3178_p7, %p3177_p6 }
  0x16   :  { %p3180_p9 = pnand %p3179_p8, %p3173_p5 }
  0x18   :  { %3183 = shalt.err (!%p3180_p9)
}
  0x19   :  { %59 = dma.hbm_to_vmem [thread:$0]  %s3397_s3, 16384, %s54_s9, [#allocation9], %s3273_s27, %s3273_s27, %s3274_s28  }
  0x1a   :  { %s3192_s15 = scalar_lea.vmem %s23_s11, 512  ;;  %p3197_p11 = scmp.lt.s32.totalorder %s23_s11, %s23_s11 }
  0x1b   :  { %p3193_p10 = scmp.ne.s32.totalorder %s23_s11, %s3192_s15  ;;  %p3198_p12 = scmp.lt.s32.totalorder %s3192_s15, %s3192_s15 }
  0x1d   :  { %p3199_p13 = por %p3198_p12, %p3197_p11 }
  0x1f   :  { %p3200_p0 = pnand %p3199_p13, %p3193_p10 }
  0x21   :  { %3203 = shalt.err (!%p3200_p0)
}
  0x22   :  { %25 = dma.hbm_to_vmem [thread:$0]  %s3394_s0, 512, %s23_s11, [#allocation3]  }
  0x23   :  { %s3277_s17 = smov [#allocation7]   ;;  %s3278_s19 = smov [#allocation10]  }
  0x24   :  { %s44_s18 = sshll.u32 %s3277_s17, 4  ;;  %s67_s20 = sshll.u32 %s3278_s19, 4  ;;  %s45_s18 = int_to_ptr.vmem [resolvable:$true] %s44_s18  ;;  %s68_s20 = int_to_ptr.vmem [resolvable:$true] %s67_s20 }
  0x25   :  { %s3212_s21 = scalar_lea.vmem %s45_s18, 64  ;;  %p3217_p2 = scmp.lt.s32.totalorder %s45_s18, %s45_s18 }
  0x26   :  { %p3213_p1 = scmp.ne.s32.totalorder %s45_s18, %s3212_s21  ;;  %p3218_p3 = scmp.lt.s32.totalorder %s3212_s21, %s3212_s21 }
  0x28   :  { %p3219_p4 = por %p3218_p3, %p3217_p2 }
  0x2a   :  { %p3220_p5 = pnand %p3219_p4, %p3213_p1 }
  0x2c   :  { %3223 = shalt.err (!%p3220_p5)
}
  0x2d   :  { %47 = dma.hbm_to_vmem [thread:$0]  %s3396_s2, 64, %s45_s18, [#allocation6]  }
  0x2e   :  { %s3232_s23 = scalar_lea.vmem %s68_s20, 4096  ;;  %p3237_p7 = scmp.lt.s32.totalorder %s68_s20, %s68_s20 }
  0x2f   :  { %p3233_p6 = scmp.ne.s32.totalorder %s68_s20, %s3232_s23  ;;  %p3238_p8 = scmp.lt.s32.totalorder %s3232_s23, %s3232_s23 }
  0x31   :  { %p3239_p9 = por %p3238_p8, %p3237_p7 }
  0x33   :  { %p3240_p10 = pnand %p3239_p9, %p3233_p6 }
  0x35   :  { %3243 = shalt.err (!%p3240_p10)
}
  0x36   :  { %s3279_s0 = smov 64   ;;  %s3280_s24 = smov 4  }
  0x37   :  { %73 = dma.hbm_to_vmem [thread:$0]  %s3399_s5, 4096, %s68_s20, [#allocation9], %s3279_s0, %s3279_s0, %s3280_s24  }
  0x38   :  { %3264 = dma.done.wait [#allocation3], 512  }
  0x39   :  { %3265 = vsyncadd [#allocation3], 4294966784 }
  0x3a   :  { %3266 = dma.done.wait [#allocation6], 16448  }
  0x3b   :  { %3267 = vsyncadd [#allocation6], 4294950848 }
  0x3c   :  { %3268 = dma.done.wait [#allocation9], 20480  }
  0x3d   :  { %3269 = vsyncadd [#allocation9], 4294946816  ;;  %v2728_v0 = vld [vmem:[#allocation5 + $0xe4] ss:$16 sps:$4 sm:$0xff]   ;;  %v2732_v2 = vld [vmem:[#allocation5 + $0xe0] ss:$16 sps:$4 sm:$0xff]  }
  0x3e   :  { %v2730_v1 = vld [vmem:[#allocation5 + $0x2e4] ss:$16 sps:$4 sm:$0xff]   ;;  %890 = vmatprep.subr.bf16.mxu0 %v2728_v0  ;;  %v2733_v3 = vld [vmem:[#allocation5 + $0x2e0] ss:$16 sps:$4 sm:$0xff]   ;;  %v93_v46 = vld [vmem:[#allocation2 + $0x8] sm:$0xff]  ;;  %s3281_s28 = smov [#allocation11]  }
  0x3f   :  { %931 = vmatprep.subr.bf16.mxu1 %v2730_v1  ;;  %v2734_v4 = vld [vmem:[#allocation5 + $0xc4] ss:$16 sps:$4 sm:$0xff]   ;;  %891 = vmatpush1.bf16.msra.mxu0 %v2732_v2  ;;  %v2738_v6 = vld [vmem:[#allocation5 + $0xc0] ss:$16 sps:$4 sm:$0xff]   ;;  %v3337_v49 = vpack.c.bf16 %v93_v46, %v93_v46  ;;  %v95_v50 = vld [vmem:[#allocation2 + $0x18] sm:$0xff]  ;;  %s2374_s29 = sshll.u32 %s3281_s28, 4  ;;  %s2375_s29 = int_to_ptr.vmem [resolvable:$true] %s2374_s29 }
  0x40   :  { %932 = vmatpush1.bf16.msra.mxu1 %v2733_v3  ;;  %v2736_v5 = vld [vmem:[#allocation5 + $0x2c4] ss:$16 sps:$4 sm:$0xff]   ;;  %892 = vmatprep.subr.bf16.mxu0 %v2734_v4  ;;  %v2739_v7 = vld [vmem:[#allocation5 + $0x2c0] ss:$16 sps:$4 sm:$0xff]   ;;  %v99_v52 = vpack.c.bf16 %v95_v50, %v95_v50  ;;  %v2878_v46 = vld [vmem:[#allocation5 + $0x1c8] ss:$16 sps:$4 sm:$0xff]   ;;  %p3249_p12 = scmp.lt.s32.totalorder %s2375_s29, %s2375_s29 }
  0x41   :  { %933 = vmatprep.subr.bf16.mxu1 %v2736_v5  ;;  %v2740_v8 = vld [vmem:[#allocation5 + $0xa4] ss:$16 sps:$4 sm:$0xff]   ;;  %v2744_v10 = vld [vmem:[#allocation5 + $0xa0] ss:$16 sps:$4 sm:$0xff]   ;;  %922 = vmatprep.mubr.bf16.mxu0 %v3337_v49  ;;  %v2884_v50 = vld [vmem:[#allocation5 + $0x1a8] ss:$16 sps:$4 sm:$0xff]  }
  0x42   :  { %v2742_v9 = vld [vmem:[#allocation5 + $0x2a4] ss:$16 sps:$4 sm:$0xff]   ;;  %v2745_v11 = vld [vmem:[#allocation5 + $0x2a0] ss:$16 sps:$4 sm:$0xff]   ;;  %963 = vmatprep.mubr.bf16.mxu1 %v99_v52  ;;  %s3244_s30 = scalar_lea.vmem %s2375_s29, 128 }
  0x43   :  { %893 = vmatpush1.bf16.msra.mxu0 %v2738_v6  ;;  %v2746_v12 = vld [vmem:[#allocation5 + $0x84] ss:$16 sps:$4 sm:$0xff]   ;;  %v2750_v14 = vld [vmem:[#allocation5 + $0x80] ss:$16 sps:$4 sm:$0xff]   ;;  %v2826_v6 = vld [vmem:[#allocation5 + $0xec] ss:$16 sps:$4 sm:$0xff]   ;;  %p3245_p11 = scmp.ne.s32.totalorder %s2375_s29, %s3244_s30  ;;  %p3250_p13 = scmp.lt.s32.totalorder %s3244_s30, %s3244_s30 }
  0x44   :  { %934 = vmatpush1.bf16.msra.mxu1 %v2739_v7  ;;  %894 = vmatprep.subr.bf16.mxu0 %v2740_v8  ;;  %v2748_v13 = vld [vmem:[#allocation5 + $0x284] ss:$16 sps:$4 sm:$0xff]   ;;  %v2751_v15 = vld [vmem:[#allocation5 + $0x280] ss:$16 sps:$4 sm:$0xff]   ;;  %v2829_v7 = vld [vmem:[#allocation5 + $0x2ec] ss:$16 sps:$4 sm:$0xff]  }
  0x45   :  { %935 = vmatprep.subr.bf16.mxu1 %v2742_v9  ;;  %v2752_v16 = vld [vmem:[#allocation5 + $0x64] ss:$16 sps:$4 sm:$0xff]   ;;  %v2756_v18 = vld [vmem:[#allocation5 + $0x60] ss:$16 sps:$4 sm:$0xff]   ;;  %p3251_p0 = por %p3250_p13, %p3249_p12 }
  0x46   :  { %v2754_v17 = vld [vmem:[#allocation5 + $0x264] ss:$16 sps:$4 sm:$0xff]   ;;  %v2757_v19 = vld [vmem:[#allocation5 + $0x260] ss:$16 sps:$4 sm:$0xff]  }
  0x47   :  { %895 = vmatpush1.bf16.msra.mxu0 %v2744_v10  ;;  %v2758_v20 = vld [vmem:[#allocation5 + $0x44] ss:$16 sps:$4 sm:$0xff]   ;;  %v2762_v22 = vld [vmem:[#allocation5 + $0x40] ss:$16 sps:$4 sm:$0xff]   ;;  %v2824_v10 = vld [vmem:[#allocation5 + $0xe8] ss:$16 sps:$4 sm:$0xff]   ;;  %p3252_p1 = pnand %p3251_p0, %p3245_p11 }
  0x48   :  { %936 = vmatpush1.bf16.msra.mxu1 %v2745_v11  ;;  %896 = vmatprep.subr.bf16.mxu0 %v2746_v12  ;;  %v2760_v21 = vld [vmem:[#allocation5 + $0x244] ss:$16 sps:$4 sm:$0xff]   ;;  %v2763_v23 = vld [vmem:[#allocation5 + $0x240] ss:$16 sps:$4 sm:$0xff]   ;;  %v2827_v11 = vld [vmem:[#allocation5 + $0x2e8] ss:$16 sps:$4 sm:$0xff]  }
  0x49   :  { %937 = vmatprep.subr.bf16.mxu1 %v2748_v13  ;;  %v2764_v24 = vld [vmem:[#allocation5 + $0x24] ss:$16 sps:$4 sm:$0xff]   ;;  %v2768_v26 = vld [vmem:[#allocation5 + $0x20] ss:$16 sps:$4 sm:$0xff]   ;;  %v2832_v12 = vld [vmem:[#allocation5 + $0xcc] ss:$16 sps:$4 sm:$0xff]  }
  0x4a   :  { %v2766_v25 = vld [vmem:[#allocation5 + $0x224] ss:$16 sps:$4 sm:$0xff]   ;;  %v2769_v27 = vld [vmem:[#allocation5 + $0x220] ss:$16 sps:$4 sm:$0xff]   ;;  %v2835_v13 = vld [vmem:[#allocation5 + $0x2cc] ss:$16 sps:$4 sm:$0xff]  }
  0x4b   :  { %897 = vmatpush1.bf16.msra.mxu0 %v2750_v14  ;;  %v2770_v28 = vld [vmem:[#allocation5 + $0x4] ss:$16 sps:$4 sm:$0xff]   ;;  %v2774_v30 = vld [vmem:[#allocation5] ss:$16 sps:$4 sm:$0xff]   ;;  %v2830_v14 = vld [vmem:[#allocation5 + $0xc8] ss:$16 sps:$4 sm:$0xff]  }
  0x4c   :  { %938 = vmatpush1.bf16.msra.mxu1 %v2751_v15  ;;  %898 = vmatprep.subr.bf16.mxu0 %v2752_v16  ;;  %v2772_v29 = vld [vmem:[#allocation5 + $0x204] ss:$16 sps:$4 sm:$0xff]   ;;  %v2775_v31 = vld [vmem:[#allocation5 + $0x200] ss:$16 sps:$4 sm:$0xff]   ;;  %v2833_v15 = vld [vmem:[#allocation5 + $0x2c8] ss:$16 sps:$4 sm:$0xff]  }
  0x4d   :  { %939 = vmatprep.subr.bf16.mxu1 %v2754_v17  ;;  %v2776_v32 = vld [vmem:[#allocation5 + $0x1e4] ss:$16 sps:$4 sm:$0xff]   ;;  %v2780_v34 = vld [vmem:[#allocation5 + $0x1e0] ss:$16 sps:$4 sm:$0xff]   ;;  %v2838_v16 = vld [vmem:[#allocation5 + $0xac] ss:$16 sps:$4 sm:$0xff]  }
  0x4e   :  { %v2778_v33 = vld [vmem:[#allocation5 + $0x3e4] ss:$16 sps:$4 sm:$0xff]   ;;  %v2781_v35 = vld [vmem:[#allocation5 + $0x3e0] ss:$16 sps:$4 sm:$0xff]   ;;  %v2841_v17 = vld [vmem:[#allocation5 + $0x2ac] ss:$16 sps:$4 sm:$0xff]  }
  0x4f   :  { %899 = vmatpush1.bf16.msra.mxu0 %v2756_v18  ;;  %v2782_v36 = vld [vmem:[#allocation5 + $0x1c4] ss:$16 sps:$4 sm:$0xff]   ;;  %v2786_v38 = vld [vmem:[#allocation5 + $0x1c0] ss:$16 sps:$4 sm:$0xff]   ;;  %v2836_v18 = vld [vmem:[#allocation5 + $0xa8] ss:$16 sps:$4 sm:$0xff]  }
  0x50   :  { %940 = vmatpush1.bf16.msra.mxu1 %v2757_v19  ;;  %900 = vmatprep.subr.bf16.mxu0 %v2758_v20  ;;  %v2784_v37 = vld [vmem:[#allocation5 + $0x3c4] ss:$16 sps:$4 sm:$0xff]   ;;  %v2787_v39 = vld [vmem:[#allocation5 + $0x3c0] ss:$16 sps:$4 sm:$0xff]   ;;  %v2839_v19 = vld [vmem:[#allocation5 + $0x2a8] ss:$16 sps:$4 sm:$0xff]  }
  0x51   :  { %941 = vmatprep.subr.bf16.mxu1 %v2760_v21  ;;  %v2788_v40 = vld [vmem:[#allocation5 + $0x1a4] ss:$16 sps:$4 sm:$0xff]   ;;  %v2792_v42 = vld [vmem:[#allocation5 + $0x1a0] ss:$16 sps:$4 sm:$0xff]   ;;  %v2844_v20 = vld [vmem:[#allocation5 + $0x8c] ss:$16 sps:$4 sm:$0xff]  }
  0x52   :  { %v2790_v41 = vld [vmem:[#allocation5 + $0x3a4] ss:$16 sps:$4 sm:$0xff]   ;;  %v2793_v43 = vld [vmem:[#allocation5 + $0x3a0] ss:$16 sps:$4 sm:$0xff]   ;;  %v2847_v21 = vld [vmem:[#allocation5 + $0x28c] ss:$16 sps:$4 sm:$0xff]  }
  0x53   :  { %901 = vmatpush1.bf16.msra.mxu0 %v2762_v22  ;;  %v2794_v44 = vld [vmem:[#allocation5 + $0x184] ss:$16 sps:$4 sm:$0xff]   ;;  %v2798_v47 = vld [vmem:[#allocation5 + $0x180] ss:$16 sps:$4 sm:$0xff]   ;;  %v2842_v22 = vld [vmem:[#allocation5 + $0x88] ss:$16 sps:$4 sm:$0xff]  }
  0x54   :  { %942 = vmatpush1.bf16.msra.mxu1 %v2763_v23  ;;  %902 = vmatprep.subr.bf16.mxu0 %v2764_v24  ;;  %v2796_v45 = vld [vmem:[#allocation5 + $0x384] ss:$16 sps:$4 sm:$0xff]   ;;  %v2799_v48 = vld [vmem:[#allocation5 + $0x380] ss:$16 sps:$4 sm:$0xff]   ;;  %v2845_v23 = vld [vmem:[#allocation5 + $0x288] ss:$16 sps:$4 sm:$0xff]  }
  0x55   :  { %943 = vmatprep.subr.bf16.mxu1 %v2766_v25  ;;  %v2800_v51 = vld [vmem:[#allocation5 + $0x164] ss:$16 sps:$4 sm:$0xff]   ;;  %v2804_v54 = vld [vmem:[#allocation5 + $0x160] ss:$16 sps:$4 sm:$0xff]   ;;  %v2850_v24 = vld [vmem:[#allocation5 + $0x6c] ss:$16 sps:$4 sm:$0xff]  }
  0x56   :  { %v2802_v53 = vld [vmem:[#allocation5 + $0x364] ss:$16 sps:$4 sm:$0xff]   ;;  %v2805_v55 = vld [vmem:[#allocation5 + $0x360] ss:$16 sps:$4 sm:$0xff]   ;;  %v2853_v25 = vld [vmem:[#allocation5 + $0x26c] ss:$16 sps:$4 sm:$0xff]  }
  0x57   :  { %903 = vmatpush1.bf16.msra.mxu0 %v2768_v26  ;;  %v2806_v56 = vld [vmem:[#allocation5 + $0x144] ss:$16 sps:$4 sm:$0xff]   ;;  %v2810_v58 = vld [vmem:[#allocation5 + $0x140] ss:$16 sps:$4 sm:$0xff]   ;;  %v2848_v26 = vld [vmem:[#allocation5 + $0x68] ss:$16 sps:$4 sm:$0xff]  }
  0x58   :  { %944 = vmatpush1.bf16.msra.mxu1 %v2769_v27  ;;  %904 = vmatprep.subr.bf16.mxu0 %v2770_v28  ;;  %v2808_v57 = vld [vmem:[#allocation5 + $0x344] ss:$16 sps:$4 sm:$0xff]   ;;  %v2811_v59 = vld [vmem:[#allocation5 + $0x340] ss:$16 sps:$4 sm:$0xff]   ;;  %v2851_v27 = vld [vmem:[#allocation5 + $0x268] ss:$16 sps:$4 sm:$0xff]  }
  0x59   :  { %945 = vmatprep.subr.bf16.mxu1 %v2772_v29  ;;  %v2812_v60 = vld [vmem:[#allocation5 + $0x124] ss:$16 sps:$4 sm:$0xff]   ;;  %v2816_v62 = vld [vmem:[#allocation5 + $0x120] ss:$16 sps:$4 sm:$0xff]   ;;  %v2856_v28 = vld [vmem:[#allocation5 + $0x4c] ss:$16 sps:$4 sm:$0xff]  }
  0x5a   :  { %v2814_v61 = vld [vmem:[#allocation5 + $0x324] ss:$16 sps:$4 sm:$0xff]   ;;  %v2817_v63 = vld [vmem:[#allocation5 + $0x320] ss:$16 sps:$4 sm:$0xff]   ;;  %v2859_v29 = vld [vmem:[#allocation5 + $0x24c] ss:$16 sps:$4 sm:$0xff]  }
  0x5b   :  { %905 = vmatpush1.bf16.msra.mxu0 %v2774_v30  ;;  %v2818_v0 = vld [vmem:[#allocation5 + $0x104] ss:$16 sps:$4 sm:$0xff]   ;;  %v2822_v2 = vld [vmem:[#allocation5 + $0x100] ss:$16 sps:$4 sm:$0xff]   ;;  %v2854_v30 = vld [vmem:[#allocation5 + $0x48] ss:$16 sps:$4 sm:$0xff]  }
  0x5c   :  { %946 = vmatpush1.bf16.msra.mxu1 %v2775_v31  ;;  %906 = vmatprep.subr.bf16.mxu0 %v2776_v32  ;;  %v2820_v1 = vld [vmem:[#allocation5 + $0x304] ss:$16 sps:$4 sm:$0xff]   ;;  %v2823_v3 = vld [vmem:[#allocation5 + $0x300] ss:$16 sps:$4 sm:$0xff]   ;;  %v2857_v31 = vld [vmem:[#allocation5 + $0x248] ss:$16 sps:$4 sm:$0xff]  }
  0x5d   :  { %947 = vmatprep.subr.bf16.mxu1 %v2778_v33  ;;  %v92_v4 = vld [vmem:[#allocation2] sm:$0xff]  ;;  %v94_v5 = vld [vmem:[#allocation2 + $0x10] sm:$0xff]  ;;  %v2862_v32 = vld [vmem:[#allocation5 + $0x2c] ss:$16 sps:$4 sm:$0xff]  }
  0x5e   :  { %v3340_v8 = vpack.c.bf16 %v92_v4, %v92_v4  ;;  %v3342_v9 = vpack.c.bf16 %v94_v5, %v94_v5  ;;  %v2865_v33 = vld [vmem:[#allocation5 + $0x22c] ss:$16 sps:$4 sm:$0xff]  }
  0x5f   :  { %907 = vmatpush2.bf16.msra.mxu0 %v2780_v34  ;;  %v2860_v34 = vld [vmem:[#allocation5 + $0x28] ss:$16 sps:$4 sm:$0xff]   ;;  %v2916_v4 = vld [vmem:[#allocation5 + $0x10c] ss:$16 sps:$4 sm:$0xff]  }
  0x60   :  { %948 = vmatpush2.bf16.msra.mxu1 %v2781_v35  ;;  %908 = vmatprep.subr.bf16.mxu0 %v2782_v36  ;;  %v2863_v35 = vld [vmem:[#allocation5 + $0x228] ss:$16 sps:$4 sm:$0xff]   ;;  %v2868_v36 = vld [vmem:[#allocation5 + $0xc] ss:$16 sps:$4 sm:$0xff]  }
  0x61   :  { %949 = vmatprep.subr.bf16.mxu1 %v2784_v37  ;;  %v2871_v37 = vld [vmem:[#allocation5 + $0x20c] ss:$16 sps:$4 sm:$0xff]  }
  0x62   :  { %v2919_v5 = vld [vmem:[#allocation5 + $0x30c] ss:$16 sps:$4 sm:$0xff]  }
  0x63   :  { %909 = vmatpush2.bf16.msra.mxu0 %v2786_v38  ;;  %v2866_v38 = vld [vmem:[#allocation5 + $0x8] ss:$16 sps:$4 sm:$0xff]  }
  0x64   :  { %950 = vmatpush2.bf16.msra.mxu1 %v2787_v39  ;;  %910 = vmatprep.subr.bf16.mxu0 %v2788_v40  ;;  %v2869_v39 = vld [vmem:[#allocation5 + $0x208] ss:$16 sps:$4 sm:$0xff]   ;;  %v2874_v40 = vld [vmem:[#allocation5 + $0x1ec] ss:$16 sps:$4 sm:$0xff]  }
  0x65   :  { %951 = vmatprep.subr.bf16.mxu1 %v2790_v41  ;;  %v2877_v41 = vld [vmem:[#allocation5 + $0x3ec] ss:$16 sps:$4 sm:$0xff]  }
  0x67   :  { %911 = vmatpush2.bf16.msra.mxu0 %v2792_v42  ;;  %v2872_v42 = vld [vmem:[#allocation5 + $0x1e8] ss:$16 sps:$4 sm:$0xff]  }
  0x68   :  { %952 = vmatpush2.bf16.msra.mxu1 %v2793_v43  ;;  %912 = vmatprep.subr.bf16.mxu0 %v2794_v44  ;;  %v2875_v43 = vld [vmem:[#allocation5 + $0x3e8] ss:$16 sps:$4 sm:$0xff]   ;;  %v2880_v44 = vld [vmem:[#allocation5 + $0x1cc] ss:$16 sps:$4 sm:$0xff]  }
  0x69   :  { %953 = vmatprep.subr.bf16.mxu1 %v2796_v45  ;;  %v2883_v45 = vld [vmem:[#allocation5 + $0x3cc] ss:$16 sps:$4 sm:$0xff]  }
  0x6b   :  { %913 = vmatpush2.bf16.msra.mxu0 %v2798_v47  ;;  %v2881_v47 = vld [vmem:[#allocation5 + $0x3c8] ss:$16 sps:$4 sm:$0xff]  }
  0x6c   :  { %954 = vmatpush2.bf16.msra.mxu1 %v2799_v48  ;;  %914 = vmatprep.subr.bf16.mxu0 %v2800_v51  ;;  %v2886_v48 = vld [vmem:[#allocation5 + $0x1ac] ss:$16 sps:$4 sm:$0xff]   ;;  %v2887_v51 = vld [vmem:[#allocation5 + $0x3a8] ss:$16 sps:$4 sm:$0xff]  }
  0x6d   :  { %955 = vmatprep.subr.bf16.mxu1 %v2802_v53  ;;  %v2895_v53 = vld [vmem:[#allocation5 + $0x38c] ss:$16 sps:$4 sm:$0xff]  }
  0x6f   :  { %915 = vmatpush2.bf16.msra.mxu0 %v2804_v54  ;;  %v2890_v54 = vld [vmem:[#allocation5 + $0x188] ss:$16 sps:$4 sm:$0xff]  }
  0x70   :  { %956 = vmatpush2.bf16.msra.mxu1 %v2805_v55  ;;  %916 = vmatprep.subr.bf16.mxu0 %v2806_v56  ;;  %v2893_v55 = vld [vmem:[#allocation5 + $0x388] ss:$16 sps:$4 sm:$0xff]   ;;  %v2898_v56 = vld [vmem:[#allocation5 + $0x16c] ss:$16 sps:$4 sm:$0xff]  }
  0x71   :  { %957 = vmatprep.subr.bf16.mxu1 %v2808_v57  ;;  %v2901_v57 = vld [vmem:[#allocation5 + $0x36c] ss:$16 sps:$4 sm:$0xff]  }
  0x73   :  { %917 = vmatpush2.bf16.msra.mxu0 %v2810_v58  ;;  %v2896_v58 = vld [vmem:[#allocation5 + $0x168] ss:$16 sps:$4 sm:$0xff]  }
  0x74   :  { %958 = vmatpush2.bf16.msra.mxu1 %v2811_v59  ;;  %918 = vmatprep.subr.bf16.mxu0 %v2812_v60  ;;  %v2899_v59 = vld [vmem:[#allocation5 + $0x368] ss:$16 sps:$4 sm:$0xff]   ;;  %v2904_v60 = vld [vmem:[#allocation5 + $0x14c] ss:$16 sps:$4 sm:$0xff]  }
  0x75   :  { %959 = vmatprep.subr.bf16.mxu1 %v2814_v61  ;;  %v2907_v61 = vld [vmem:[#allocation5 + $0x34c] ss:$16 sps:$4 sm:$0xff]  }
  0x77   :  { %919 = vmatpush2.bf16.msra.mxu0 %v2816_v62  ;;  %v2902_v62 = vld [vmem:[#allocation5 + $0x148] ss:$16 sps:$4 sm:$0xff]  }
  0x78   :  { %960 = vmatpush2.bf16.msra.mxu1 %v2817_v63  ;;  %920 = vmatprep.subr.bf16.mxu0 %v2818_v0  ;;  %v2905_v63 = vld [vmem:[#allocation5 + $0x348] ss:$16 sps:$4 sm:$0xff]   ;;  %v2910_v0 = vld [vmem:[#allocation5 + $0x12c] ss:$16 sps:$4 sm:$0xff]  }
  0x79   :  { %961 = vmatprep.subr.bf16.mxu1 %v2820_v1  ;;  %v2913_v1 = vld [vmem:[#allocation5 + $0x32c] ss:$16 sps:$4 sm:$0xff]  }
  0x7b   :  { %921 = vmatpush2.bf16.msra.mxu0 %v2822_v2  ;;  %v2908_v2 = vld [vmem:[#allocation5 + $0x128] ss:$16 sps:$4 sm:$0xff]  }
  0x7c   :  { %962 = vmatpush2.bf16.msra.mxu1 %v2823_v3  ;;  %972 = vmatprep.subr.bf16.mxu0 %v2826_v6  ;;  %v2911_v3 = vld [vmem:[#allocation5 + $0x328] ss:$16 sps:$4 sm:$0xff]  }
  0x7d   :  { %1013 = vmatprep.subr.bf16.mxu1 %v2829_v7  ;;  %v2914_v6 = vld [vmem:[#allocation5 + $0x108] ss:$16 sps:$4 sm:$0xff]  }
  0x7e   :  { %923 = vmatmul.mubr.bf16.vlgmr.msra.gmra.mxu0 %v3340_v8  ;;  %v2917_v7 = vld [vmem:[#allocation5 + $0x308] ss:$16 sps:$4 sm:$0xff]  }
  0x7f   :  { %964 = vmatmul.mubr.bf16.vlgmr.msra.gmra.mxu1 %v3342_v9  ;;  %973 = vmatpush1.bf16.msra.mxu0 %v2824_v10  ;;  %v2922_v10 = vld [vmem:[#allocation8 + $0xe4] ss:$16 sps:$4 sm:$0xff]  }
  0x80   :  { %1014 = vmatpush1.bf16.msra.mxu1 %v2827_v11  ;;  %974 = vmatprep.subr.bf16.mxu0 %v2832_v12  ;;  %v2920_v11 = vld [vmem:[#allocation8 + $0xe0] ss:$16 sps:$4 sm:$0xff]   ;;  %v2925_v12 = vld [vmem:[#allocation8 + $0xc4] ss:$16 sps:$4 sm:$0xff]  }
  0x81   :  { %1015 = vmatprep.subr.bf16.mxu1 %v2835_v13  ;;  %1004 = vmatprep.mubr.bf16.mxu0 %v3337_v49  ;;  %v2889_v49 = vld [vmem:[#allocation5 + $0x3ac] ss:$16 sps:$4 sm:$0xff]   ;;  %v2923_v13 = vld [vmem:[#allocation8 + $0xc0] ss:$16 sps:$4 sm:$0xff]  }
  0x82   :  { %1045 = vmatprep.mubr.bf16.mxu1 %v99_v52  ;;  %v2892_v52 = vld [vmem:[#allocation5 + $0x18c] ss:$16 sps:$4 sm:$0xff]  }
  0x83   :  { %975 = vmatpush1.bf16.msra.mxu0 %v2830_v14  ;;  %v2928_v14 = vld [vmem:[#allocation8 + $0xa4] ss:$16 sps:$4 sm:$0xff]  }
  0x84   :  { %1016 = vmatpush1.bf16.msra.mxu1 %v2833_v15  ;;  %976 = vmatprep.subr.bf16.mxu0 %v2838_v16  ;;  %v2926_v15 = vld [vmem:[#allocation8 + $0xa0] ss:$16 sps:$4 sm:$0xff]   ;;  %v2931_v16 = vld [vmem:[#allocation8 + $0x84] ss:$16 sps:$4 sm:$0xff]  }
  0x85   :  { %1017 = vmatprep.subr.bf16.mxu1 %v2841_v17  ;;  %v2929_v17 = vld [vmem:[#allocation8 + $0x80] ss:$16 sps:$4 sm:$0xff]  }
  0x87   :  { %977 = vmatpush1.bf16.msra.mxu0 %v2836_v18  ;;  %v2970_v18 = vld [vmem:[#allocation8 + $0x2e4] ss:$16 sps:$4 sm:$0xff]  }
  0x88   :  { %1018 = vmatpush1.bf16.msra.mxu1 %v2839_v19  ;;  %978 = vmatprep.subr.bf16.mxu0 %v2844_v20  ;;  %v2934_v19 = vld [vmem:[#allocation8 + $0x64] ss:$16 sps:$4 sm:$0xff]   ;;  %v2968_v20 = vld [vmem:[#allocation8 + $0x2e0] ss:$16 sps:$4 sm:$0xff]  }
  0x89   :  { %1019 = vmatprep.subr.bf16.mxu1 %v2847_v21  ;;  %v2974_v21 = vld [vmem:[#allocation8 + $0x2c0] ss:$16 sps:$4 sm:$0xff]  }
  0x8b   :  { %979 = vmatpush1.bf16.msra.mxu0 %v2842_v22  ;;  %v2937_v22 = vld [vmem:[#allocation8 + $0x44] ss:$16 sps:$4 sm:$0xff]  }
  0x8c   :  { %1020 = vmatpush1.bf16.msra.mxu1 %v2845_v23  ;;  %980 = vmatprep.subr.bf16.mxu0 %v2850_v24  ;;  %v2935_v23 = vld [vmem:[#allocation8 + $0x40] ss:$16 sps:$4 sm:$0xff]  }
  0x8d   :  { %1021 = vmatprep.subr.bf16.mxu1 %v2853_v25  ;;  %v2980_v24 = vld [vmem:[#allocation8 + $0x2a0] ss:$16 sps:$4 sm:$0xff]   ;;  %v2982_v25 = vld [vmem:[#allocation8 + $0x2a4] ss:$16 sps:$4 sm:$0xff]  }
  0x8f   :  { %981 = vmatpush1.bf16.msra.mxu0 %v2848_v26  ;;  %v2940_v26 = vld [vmem:[#allocation8 + $0x24] ss:$16 sps:$4 sm:$0xff]  }
  0x90   :  { %1022 = vmatpush1.bf16.msra.mxu1 %v2851_v27  ;;  %982 = vmatprep.subr.bf16.mxu0 %v2856_v28  ;;  %v2938_v27 = vld [vmem:[#allocation8 + $0x20] ss:$16 sps:$4 sm:$0xff]  }
  0x91   :  { %1023 = vmatprep.subr.bf16.mxu1 %v2859_v29  ;;  %v2986_v28 = vld [vmem:[#allocation8 + $0x280] ss:$16 sps:$4 sm:$0xff]   ;;  %v2988_v29 = vld [vmem:[#allocation8 + $0x284] ss:$16 sps:$4 sm:$0xff]  }
  0x93   :  { %983 = vmatpush1.bf16.msra.mxu0 %v2854_v30  ;;  %v2943_v30 = vld [vmem:[#allocation8 + $0x4] ss:$16 sps:$4 sm:$0xff]  }
  0x94   :  { %1024 = vmatpush1.bf16.msra.mxu1 %v2857_v31  ;;  %984 = vmatprep.subr.bf16.mxu0 %v2862_v32  ;;  %v2941_v31 = vld [vmem:[#allocation8] ss:$16 sps:$4 sm:$0xff]  }
  0x95   :  { %1025 = vmatprep.subr.bf16.mxu1 %v2865_v33  ;;  %v2992_v32 = vld [vmem:[#allocation8 + $0x260] ss:$16 sps:$4 sm:$0xff]   ;;  %v2994_v33 = vld [vmem:[#allocation8 + $0x264] ss:$16 sps:$4 sm:$0xff]  }
  0x97   :  { %985 = vmatpush1.bf16.msra.mxu0 %v2860_v34  ;;  %v2946_v34 = vld [vmem:[#allocation8 + $0x1e4] ss:$16 sps:$4 sm:$0xff]  }
  0x98   :  { %1026 = vmatpush1.bf16.msra.mxu1 %v2863_v35  ;;  %986 = vmatprep.subr.bf16.mxu0 %v2868_v36  ;;  %v2944_v35 = vld [vmem:[#allocation8 + $0x1e0] ss:$16 sps:$4 sm:$0xff]  }
  0x99   :  { %1027 = vmatprep.subr.bf16.mxu1 %v2871_v37  ;;  %v2998_v36 = vld [vmem:[#allocation8 + $0x240] ss:$16 sps:$4 sm:$0xff]   ;;  %v3000_v37 = vld [vmem:[#allocation8 + $0x244] ss:$16 sps:$4 sm:$0xff]  }
  0x9b   :  { %987 = vmatpush1.bf16.msra.mxu0 %v2866_v38  ;;  %v2949_v38 = vld [vmem:[#allocation8 + $0x1c4] ss:$16 sps:$4 sm:$0xff]  }
  0x9c   :  { %1028 = vmatpush1.bf16.msra.mxu1 %v2869_v39  ;;  %988 = vmatprep.subr.bf16.mxu0 %v2874_v40  ;;  %v2947_v39 = vld [vmem:[#allocation8 + $0x1c0] ss:$16 sps:$4 sm:$0xff]  }
  0x9d   :  { %1029 = vmatprep.subr.bf16.mxu1 %v2877_v41  ;;  %v3004_v40 = vld [vmem:[#allocation8 + $0x220] ss:$16 sps:$4 sm:$0xff]   ;;  %v3006_v41 = vld [vmem:[#allocation8 + $0x224] ss:$16 sps:$4 sm:$0xff]  }
  0x9f   :  { %989 = vmatpush2.bf16.msra.mxu0 %v2872_v42  ;;  %v2952_v42 = vld [vmem:[#allocation8 + $0x1a4] ss:$16 sps:$4 sm:$0xff]  }
  0xa0   :  { %1030 = vmatpush2.bf16.msra.mxu1 %v2875_v43  ;;  %990 = vmatprep.subr.bf16.mxu0 %v2880_v44  ;;  %v2950_v43 = vld [vmem:[#allocation8 + $0x1a0] ss:$16 sps:$4 sm:$0xff]  }
  0xa1   :  { %1031 = vmatprep.subr.bf16.mxu1 %v2883_v45  ;;  %v3010_v44 = vld [vmem:[#allocation8 + $0x200] ss:$16 sps:$4 sm:$0xff]   ;;  %v3012_v45 = vld [vmem:[#allocation8 + $0x204] ss:$16 sps:$4 sm:$0xff]  }
  0xa3   :  { %991 = vmatpush2.bf16.msra.mxu0 %v2878_v46  ;;  %v2955_v46 = vld [vmem:[#allocation8 + $0x184] ss:$16 sps:$4 sm:$0xff]  }
  0xa4   :  { %1032 = vmatpush2.bf16.msra.mxu1 %v2881_v47  ;;  %992 = vmatprep.subr.bf16.mxu0 %v2886_v48  ;;  %v2953_v47 = vld [vmem:[#allocation8 + $0x180] ss:$16 sps:$4 sm:$0xff]  }
  0xa5   :  { %1033 = vmatprep.subr.bf16.mxu1 %v2889_v49  ;;  %v3016_v48 = vld [vmem:[#allocation8 + $0x3e0] ss:$16 sps:$4 sm:$0xff]   ;;  %v3018_v49 = vld [vmem:[#allocation8 + $0x3e4] ss:$16 sps:$4 sm:$0xff]  }
  0xa7   :  { %993 = vmatpush2.bf16.msra.mxu0 %v2884_v50  ;;  %v2958_v50 = vld [vmem:[#allocation8 + $0x164] ss:$16 sps:$4 sm:$0xff]  }
  0xa8   :  { %1034 = vmatpush2.bf16.msra.mxu1 %v2887_v51  ;;  %994 = vmatprep.subr.bf16.mxu0 %v2892_v52  ;;  %v2956_v51 = vld [vmem:[#allocation8 + $0x160] ss:$16 sps:$4 sm:$0xff]  }
  0xa9   :  { %1035 = vmatprep.subr.bf16.mxu1 %v2895_v53  ;;  %v3022_v52 = vld [vmem:[#allocation8 + $0x3c0] ss:$16 sps:$4 sm:$0xff]   ;;  %v3024_v53 = vld [vmem:[#allocation8 + $0x3c4] ss:$16 sps:$4 sm:$0xff]  }
  0xab   :  { %995 = vmatpush2.bf16.msra.mxu0 %v2890_v54  ;;  %v2961_v54 = vld [vmem:[#allocation8 + $0x144] ss:$16 sps:$4 sm:$0xff]  }
  0xac   :  { %1036 = vmatpush2.bf16.msra.mxu1 %v2893_v55  ;;  %996 = vmatprep.subr.bf16.mxu0 %v2898_v56  ;;  %v2959_v55 = vld [vmem:[#allocation8 + $0x140] ss:$16 sps:$4 sm:$0xff]  }
  0xad   :  { %1037 = vmatprep.subr.bf16.mxu1 %v2901_v57  ;;  %v3028_v56 = vld [vmem:[#allocation8 + $0x3a0] ss:$16 sps:$4 sm:$0xff]   ;;  %v3030_v57 = vld [vmem:[#allocation8 + $0x3a4] ss:$16 sps:$4 sm:$0xff]  }
  0xaf   :  { %997 = vmatpush2.bf16.msra.mxu0 %v2896_v58  ;;  %v2964_v58 = vld [vmem:[#allocation8 + $0x124] ss:$16 sps:$4 sm:$0xff]  }
  0xb0   :  { %1038 = vmatpush2.bf16.msra.mxu1 %v2899_v59  ;;  %998 = vmatprep.subr.bf16.mxu0 %v2904_v60  ;;  %v2962_v59 = vld [vmem:[#allocation8 + $0x120] ss:$16 sps:$4 sm:$0xff]  }
  0xb1   :  { %1039 = vmatprep.subr.bf16.mxu1 %v2907_v61  ;;  %v3034_v60 = vld [vmem:[#allocation8 + $0x380] ss:$16 sps:$4 sm:$0xff]   ;;  %v3036_v61 = vld [vmem:[#allocation8 + $0x384] ss:$16 sps:$4 sm:$0xff]  }
  0xb3   :  { %999 = vmatpush2.bf16.msra.mxu0 %v2902_v62  ;;  %v2967_v62 = vld [vmem:[#allocation8 + $0x104] ss:$16 sps:$4 sm:$0xff]  }
  0xb4   :  { %1040 = vmatpush2.bf16.msra.mxu1 %v2905_v63  ;;  %1000 = vmatprep.subr.bf16.mxu0 %v2910_v0  ;;  %v2965_v63 = vld [vmem:[#allocation8 + $0x100] ss:$16 sps:$4 sm:$0xff]  }
  0xb5   :  { %1041 = vmatprep.subr.bf16.mxu1 %v2913_v1  ;;  %v3040_v0 = vld [vmem:[#allocation8 + $0x360] ss:$16 sps:$4 sm:$0xff]   ;;  %v3042_v1 = vld [vmem:[#allocation8 + $0x364] ss:$16 sps:$4 sm:$0xff]  }
  0xb7   :  { %1001 = vmatpush2.bf16.msra.mxu0 %v2908_v2  ;;  %v2973_v2 = vld [vmem:[#allocation8 + $0xec] ss:$16 sps:$4 sm:$0xff]  }
  0xb8   :  { %1042 = vmatpush2.bf16.msra.mxu1 %v2911_v3  ;;  %1002 = vmatprep.subr.bf16.mxu0 %v2916_v4  ;;  %v3046_v3 = vld [vmem:[#allocation8 + $0x340] ss:$16 sps:$4 sm:$0xff]   ;;  %v3048_v4 = vld [vmem:[#allocation8 + $0x344] ss:$16 sps:$4 sm:$0xff]  }
  0xb9   :  { %1043 = vmatprep.subr.bf16.mxu1 %v2919_v5  ;;  %v3054_v5 = vld [vmem:[#allocation8 + $0x324] ss:$16 sps:$4 sm:$0xff]  }
  0xbb   :  { %1003 = vmatpush2.bf16.msra.mxu0 %v2914_v6  ;;  %v3052_v6 = vld [vmem:[#allocation8 + $0x320] ss:$16 sps:$4 sm:$0xff]  }
  0xbc   :  { %1044 = vmatpush2.bf16.msra.mxu1 %v2917_v7  ;;  %1852 = vmatprep.subr.bf16.mxu0 %v2922_v10  ;;  %v3060_v7 = vld [vmem:[#allocation8 + $0x304] ss:$16 sps:$4 sm:$0xff]   ;;  %v3058_v10 = vld [vmem:[#allocation8 + $0x300] ss:$16 sps:$4 sm:$0xff]  }
  0xbd   :  { %1893 = vmatprep.subr.bf16.mxu1 %v2970_v18 }
  0xbe   :  { %1005 = vmatmul.mubr.bf16.vlgmr.msra.gmra.mxu0 %v3340_v8  ;;  %v2932_v8 = vld [vmem:[#allocation8 + $0x60] ss:$16 sps:$4 sm:$0xff]  }
  0xbf   :  { %1046 = vmatmul.mubr.bf16.vlgmr.msra.gmra.mxu1 %v3342_v9  ;;  %1853 = vmatpush1.bf16.msra.mxu0 %v2920_v11  ;;  %v2976_v9 = vld [vmem:[#allocation8 + $0x2c4] ss:$16 sps:$4 sm:$0xff]   ;;  %v3066_v11 = vld [vmem:[#allocation8 + $0x2ec] ss:$16 sps:$4 sm:$0xff]  }
  0xc0   :  { %1854 = vmatprep.subr.bf16.mxu0 %v2925_v12  ;;  %1894 = vmatpush1.bf16.msra.mxu1 %v2968_v20  ;;  %v230_v12 = vlaneseq }
  0xc1   :  { %1895 = vmatprep.subr.bf16.mxu1 %v2976_v9 }
  0xc3   :  { %1855 = vmatpush1.bf16.msra.mxu0 %v2923_v13  ;;  %v3349_v13 = vshrl.u32 %v230_v12, 7 }
  0xc4   :  { %1856 = vmatprep.subr.bf16.mxu0 %v2928_v14  ;;  %1896 = vmatpush1.bf16.msra.mxu1 %v2974_v21 }
  0xc5   :  { %1897 = vmatprep.subr.bf16.mxu1 %v2982_v25  ;;  %v232_v14 = vsub.s32 0, %v3349_v13 }
  0xc7   :  { %1857 = vmatpush1.bf16.msra.mxu0 %v2926_v15  ;;  %v3352_v15 = vld [vmem:[#allocation7] sm:$0xf] }
  0xc8   :  { %1858 = vmatprep.subr.bf16.mxu0 %v2931_v16  ;;  %1898 = vmatpush1.bf16.msra.mxu1 %v2980_v24  ;;  %v236_v16 = vsub.s32 1, %v3349_v13 }
  0xc9   :  { %1899 = vmatprep.subr.bf16.mxu1 %v2988_v29 }
  0xca   :  { %v237_v18 = vrot.slane %v3352_v15, %v236_v16 }
  0xcb   :  { %1859 = vmatpush1.bf16.msra.mxu0 %v2929_v17  ;;  %v233_v17 = vrot.slane %v3352_v15, %v232_v14 }
  0xcc   :  { %1860 = vmatprep.subr.bf16.mxu0 %v2934_v19  ;;  %1900 = vmatpush1.bf16.msra.mxu1 %v2986_v28 }
  0xcd   :  { %1901 = vmatprep.subr.bf16.mxu1 %v2994_v33 }
  0xcf   :  { %1861 = vmatpush1.bf16.msra.mxu0 %v2932_v8 }
  0xd0   :  { %1862 = vmatprep.subr.bf16.mxu0 %v2937_v22  ;;  %1902 = vmatpush1.bf16.msra.mxu1 %v2992_v32  ;;  %v2971_v32 = vld [vmem:[#allocation8 + $0xe8] ss:$16 sps:$4 sm:$0xff]  }
  0xd1   :  { %1903 = vmatprep.subr.bf16.mxu1 %v3000_v37  ;;  %v2983_v37 = vld [vmem:[#allocation8 + $0xa8] ss:$16 sps:$4 sm:$0xff]  }
  0xd3   :  { %1863 = vmatpush1.bf16.msra.mxu0 %v2935_v23 }
  0xd4   :  { %1864 = vmatprep.subr.bf16.mxu0 %v2940_v26  ;;  %1904 = vmatpush1.bf16.msra.mxu1 %v2998_v36  ;;  %v2985_v36 = vld [vmem:[#allocation8 + $0xac] ss:$16 sps:$4 sm:$0xff]  }
  0xd5   :  { %1905 = vmatprep.subr.bf16.mxu1 %v3006_v41  ;;  %v2995_v41 = vld [vmem:[#allocation8 + $0x68] ss:$16 sps:$4 sm:$0xff]  }
  0xd7   :  { %1865 = vmatpush1.bf16.msra.mxu0 %v2938_v27 }
  0xd8   :  { %1866 = vmatprep.subr.bf16.mxu0 %v2943_v30  ;;  %1906 = vmatpush1.bf16.msra.mxu1 %v3004_v40  ;;  %v2997_v40 = vld [vmem:[#allocation8 + $0x6c] ss:$16 sps:$4 sm:$0xff]  }
  0xd9   :  { %1907 = vmatprep.subr.bf16.mxu1 %v3012_v45  ;;  %v3007_v45 = vld [vmem:[#allocation8 + $0x28] ss:$16 sps:$4 sm:$0xff]  }
  0xdb   :  { %1867 = vmatpush1.bf16.msra.mxu0 %v2941_v31 }
  0xdc   :  { %1868 = vmatprep.subr.bf16.mxu0 %v2946_v34  ;;  %1908 = vmatpush1.bf16.msra.mxu1 %v3010_v44  ;;  %v2979_v34 = vld [vmem:[#allocation8 + $0xcc] ss:$16 sps:$4 sm:$0xff]  }
  0xdd   :  { %1909 = vmatprep.subr.bf16.mxu1 %v3018_v49  ;;  %v3009_v44 = vld [vmem:[#allocation8 + $0x2c] ss:$16 sps:$4 sm:$0xff]   ;;  %v3019_v49 = vld [vmem:[#allocation8 + $0x1e8] ss:$16 sps:$4 sm:$0xff]  }
  0xdf   :  { %1869 = vmatpush2.bf16.msra.mxu0 %v2944_v35  ;;  %v2977_v35 = vld [vmem:[#allocation8 + $0xc8] ss:$16 sps:$4 sm:$0xff]  }
  0xe0   :  { %1870 = vmatprep.subr.bf16.mxu0 %v2949_v38  ;;  %1910 = vmatpush2.bf16.msra.mxu1 %v3016_v48  ;;  %v2991_v38 = vld [vmem:[#allocation8 + $0x8c] ss:$16 sps:$4 sm:$0xff]  }
  0xe1   :  { %1911 = vmatprep.subr.bf16.mxu1 %v3024_v53  ;;  %v3021_v48 = vld [vmem:[#allocation8 + $0x1ec] ss:$16 sps:$4 sm:$0xff]   ;;  %v3031_v53 = vld [vmem:[#allocation8 + $0x1a8] ss:$16 sps:$4 sm:$0xff]  }
  0xe3   :  { %1871 = vmatpush2.bf16.msra.mxu0 %v2947_v39  ;;  %v2989_v39 = vld [vmem:[#allocation8 + $0x88] ss:$16 sps:$4 sm:$0xff]  }
  0xe4   :  { %1872 = vmatprep.subr.bf16.mxu0 %v2952_v42  ;;  %1912 = vmatpush2.bf16.msra.mxu1 %v3022_v52  ;;  %v3003_v42 = vld [vmem:[#allocation8 + $0x4c] ss:$16 sps:$4 sm:$0xff]  }
  0xe5   :  { %1913 = vmatprep.subr.bf16.mxu1 %v3030_v57  ;;  %v3033_v52 = vld [vmem:[#allocation8 + $0x1ac] ss:$16 sps:$4 sm:$0xff]   ;;  %v3043_v57 = vld [vmem:[#allocation8 + $0x168] ss:$16 sps:$4 sm:$0xff]  }
  0xe7   :  { %1873 = vmatpush2.bf16.msra.mxu0 %v2950_v43  ;;  %v3001_v43 = vld [vmem:[#allocation8 + $0x48] ss:$16 sps:$4 sm:$0xff]  }
  0xe8   :  { %1874 = vmatprep.subr.bf16.mxu0 %v2955_v46  ;;  %1914 = vmatpush2.bf16.msra.mxu1 %v3028_v56  ;;  %v3015_v46 = vld [vmem:[#allocation8 + $0xc] ss:$16 sps:$4 sm:$0xff]  }
  0xe9   :  { %1915 = vmatprep.subr.bf16.mxu1 %v3036_v61  ;;  %v3045_v56 = vld [vmem:[#allocation8 + $0x16c] ss:$16 sps:$4 sm:$0xff]   ;;  %v3049_v61 = vld [vmem:[#allocation8 + $0x148] ss:$16 sps:$4 sm:$0xff]  }
  0xeb   :  { %1875 = vmatpush2.bf16.msra.mxu0 %v2953_v47  ;;  %v3013_v47 = vld [vmem:[#allocation8 + $0x8] ss:$16 sps:$4 sm:$0xff]  }
  0xec   :  { %1876 = vmatprep.subr.bf16.mxu0 %v2958_v50  ;;  %1916 = vmatpush2.bf16.msra.mxu1 %v3034_v60  ;;  %v3027_v50 = vld [vmem:[#allocation8 + $0x1cc] ss:$16 sps:$4 sm:$0xff]   ;;  %v244_v60 = vsub.s32 3, %v3349_v13 }
  0xed   :  { %1917 = vmatprep.subr.bf16.mxu1 %v3042_v1 }
  0xef   :  { %1877 = vmatpush2.bf16.msra.mxu0 %v2956_v51  ;;  %v3025_v51 = vld [vmem:[#allocation8 + $0x1c8] ss:$16 sps:$4 sm:$0xff]  }
  0xf0   :  { %1878 = vmatprep.subr.bf16.mxu0 %v2961_v54  ;;  %1918 = vmatpush2.bf16.msra.mxu1 %v3040_v0  ;;  %v3039_v54 = vld [vmem:[#allocation8 + $0x18c] ss:$16 sps:$4 sm:$0xff]   ;;  %v245_v0 = vrot.slane %v3352_v15, %v244_v60 }
  0xf1   :  { %1919 = vmatprep.subr.bf16.mxu1 %v3048_v4  ;;  %v3055_v4 = vld [vmem:[#allocation8 + $0x128] ss:$16 sps:$4 sm:$0xff]  }
  0xf3   :  { %1879 = vmatpush2.bf16.msra.mxu0 %v2959_v55  ;;  %v3037_v55 = vld [vmem:[#allocation8 + $0x188] ss:$16 sps:$4 sm:$0xff]  }
  0xf4   :  { %1880 = vmatprep.subr.bf16.mxu0 %v2964_v58  ;;  %1920 = vmatpush2.bf16.msra.mxu1 %v3046_v3  ;;  %v240_v58 = vsub.s32 2, %v3349_v13 }
  0xf5   :  { %1921 = vmatprep.subr.bf16.mxu1 %v3054_v5 }
  0xf7   :  { %1881 = vmatpush2.bf16.msra.mxu0 %v2962_v59  ;;  %v3051_v59 = vld [vmem:[#allocation8 + $0x14c] ss:$16 sps:$4 sm:$0xff]  }
  0xf8   :  { %1882 = vmatprep.subr.bf16.mxu0 %v2967_v62  ;;  %1922 = vmatpush2.bf16.msra.mxu1 %v3052_v6  ;;  %v241_v62 = vrot.slane %v3352_v15, %v240_v58 }
  0xf9   :  { %1923 = vmatprep.subr.bf16.mxu1 %v3060_v7  ;;  %v3063_v7 = vld [vmem:[#allocation8 + $0x10c] ss:$16 sps:$4 sm:$0xff]  }
  0xfb   :  { %1883 = vmatpush2.bf16.msra.mxu0 %v2965_v63  ;;  %v3057_v63 = vld [vmem:[#allocation8 + $0x12c] ss:$16 sps:$4 sm:$0xff]  }
  0xfc   :  { %1934 = vmatprep.subr.bf16.mxu0 %v2973_v2  ;;  %1924 = vmatpush2.bf16.msra.mxu1 %v3058_v10 }
  0xfd   :  { %1975 = vmatprep.subr.bf16.mxu1 %v3066_v11 }
 0x13e   :  { %v924_v19 = vpop.f32.mrf.mxu0 }
 0x13f   :  { %v965_v20 = vpop.f32.mrf.mxu1  ;;  %v925_v8 = vadd.f32 %v924_v19, %v233_v17  ;;  %v3061_v19 = vld [vmem:[#allocation8 + $0x108] ss:$16 sps:$4 sm:$0xff]  }
 0x140   :  { %v926_v21 = vpop.f32.mrf.mxu0 }
 0x141   :  { %v967_v9 = vpop.f32.mrf.mxu1  ;;  %v966_v22 = vadd.f32 %v965_v20, %v925_v8  ;;  %v927_v23 = vadd.f32 %v926_v21, %v237_v18 }
 0x142   :  { %v928_v24 = vpop.f32.mrf.mxu0 }
 0x143   :  { %v969_v25 = vpop.f32.mrf.mxu1  ;;  %v968_v26 = vadd.f32 %v967_v9, %v927_v23  ;;  %v1054_v27 = vmax.f32 %v966_v22, 0.0  ;;  %v3064_v22 = vld [vmem:[#allocation8 + $0x2e8] ss:$16 sps:$4 sm:$0xff]   ;;  %v3069_v24 = vld [vmem:[#allocation8 + $0x2cc] ss:$16 sps:$4 sm:$0xff]  }
 0x144   :  { %v929_v28 = vpop.f32.mrf.mxu0  ;;  %v3067_v25 = vld [vmem:[#allocation8 + $0x2c8] ss:$16 sps:$4 sm:$0xff]  }
 0x145   :  { %v970_v29 = vpop.f32.mrf.mxu1  ;;  %v1055_v30 = vmax.f32 %v968_v26, 0.0  ;;  %v3361_v33 = vpack.c.bf16 %v1054_v27, %v1054_v27  ;;  %v3072_v26 = vld [vmem:[#allocation8 + $0x2ac] ss:$16 sps:$4 sm:$0xff]   ;;  %v3070_v27 = vld [vmem:[#allocation8 + $0x2a8] ss:$16 sps:$4 sm:$0xff]  }
 0x146   :  { %v3075_v28 = vld [vmem:[#allocation8 + $0x28c] ss:$16 sps:$4 sm:$0xff]  }
 0x147   :  { %v1059_v31 = vpack.c.bf16 %v1055_v30, %v1055_v30  ;;  %v3112_v29 = vld [vmem:[#allocation10 + $0x78] sm:$0xff]  }
 0x148   :  { %v3113_v30 = vld [vmem:[#allocation10 + $0x38] sm:$0xff]  }
 0x149   :  { %1884 = vmatprep.mubr.bf16.mxu0 %v1059_v31 }
 0x14a   :  { %1885 = vmatmul.mubr.bf16.vlgmr.msra.gmra.mxu0 %v3361_v33 }
 0x14b   :  { %1935 = vmatpush1.bf16.msra.mxu0 %v2971_v32  ;;  %1966 = vmatprep.mubr.bf16.mxu0 %v1059_v31  ;;  %v3114_v31 = vld [vmem:[#allocation10 + $0x70] sm:$0xff]   ;;  %v3073_v32 = vld [vmem:[#allocation8 + $0x288] ss:$16 sps:$4 sm:$0xff]  }
 0x14c   :  { %1936 = vmatprep.subr.bf16.mxu0 %v2979_v34  ;;  %v3115_v34 = vld [vmem:[#allocation10 + $0x30] sm:$0xff]  }
 0x14f   :  { %1937 = vmatpush1.bf16.msra.mxu0 %v2977_v35  ;;  %v3116_v35 = vld [vmem:[#allocation10 + $0x68] sm:$0xff]  }
 0x150   :  { %1938 = vmatprep.subr.bf16.mxu0 %v2985_v36  ;;  %v3076_v36 = vld [vmem:[#allocation8 + $0x268] ss:$16 sps:$4 sm:$0xff]  }
 0x153   :  { %1939 = vmatpush1.bf16.msra.mxu0 %v2983_v37  ;;  %v3117_v37 = vld [vmem:[#allocation10 + $0x28] sm:$0xff]  }
 0x154   :  { %1940 = vmatprep.subr.bf16.mxu0 %v2991_v38  ;;  %v3081_v38 = vld [vmem:[#allocation8 + $0x24c] ss:$16 sps:$4 sm:$0xff]  }
 0x157   :  { %1941 = vmatpush1.bf16.msra.mxu0 %v2989_v39  ;;  %v3118_v39 = vld [vmem:[#allocation10 + $0x60] sm:$0xff]  }
 0x158   :  { %1942 = vmatprep.subr.bf16.mxu0 %v2997_v40  ;;  %v3079_v40 = vld [vmem:[#allocation8 + $0x248] ss:$16 sps:$4 sm:$0xff]  }
 0x15b   :  { %1943 = vmatpush1.bf16.msra.mxu0 %v2995_v41  ;;  %v3119_v41 = vld [vmem:[#allocation10 + $0x20] sm:$0xff]  }
 0x15c   :  { %1944 = vmatprep.subr.bf16.mxu0 %v3003_v42  ;;  %v3084_v42 = vld [vmem:[#allocation8 + $0x22c] ss:$16 sps:$4 sm:$0xff]  }
 0x15f   :  { %1945 = vmatpush1.bf16.msra.mxu0 %v3001_v43  ;;  %v3120_v43 = vld [vmem:[#allocation10 + $0x58] sm:$0xff]  }
 0x160   :  { %1946 = vmatprep.subr.bf16.mxu0 %v3009_v44  ;;  %v3082_v44 = vld [vmem:[#allocation8 + $0x228] ss:$16 sps:$4 sm:$0xff]  }
 0x163   :  { %1947 = vmatpush1.bf16.msra.mxu0 %v3007_v45  ;;  %v3121_v45 = vld [vmem:[#allocation10 + $0x18] sm:$0xff]  }
 0x164   :  { %1948 = vmatprep.subr.bf16.mxu0 %v3015_v46  ;;  %v3087_v46 = vld [vmem:[#allocation8 + $0x20c] ss:$16 sps:$4 sm:$0xff]  }
 0x167   :  { %1949 = vmatpush1.bf16.msra.mxu0 %v3013_v47  ;;  %v3122_v47 = vld [vmem:[#allocation10 + $0x50] sm:$0xff]  }
 0x168   :  { %1950 = vmatprep.subr.bf16.mxu0 %v3021_v48  ;;  %v3085_v48 = vld [vmem:[#allocation8 + $0x208] ss:$16 sps:$4 sm:$0xff]  }
 0x16b   :  { %1951 = vmatpush2.bf16.msra.mxu0 %v3019_v49  ;;  %v3090_v49 = vld [vmem:[#allocation8 + $0x3ec] ss:$16 sps:$4 sm:$0xff]  }
 0x16c   :  { %1952 = vmatprep.subr.bf16.mxu0 %v3027_v50  ;;  %v3088_v50 = vld [vmem:[#allocation8 + $0x3e8] ss:$16 sps:$4 sm:$0xff]  }
 0x16f   :  { %1953 = vmatpush2.bf16.msra.mxu0 %v3025_v51  ;;  %v3093_v51 = vld [vmem:[#allocation8 + $0x3cc] ss:$16 sps:$4 sm:$0xff]  }
 0x170   :  { %1954 = vmatprep.subr.bf16.mxu0 %v3033_v52  ;;  %v3091_v52 = vld [vmem:[#allocation8 + $0x3c8] ss:$16 sps:$4 sm:$0xff]  }
 0x173   :  { %1955 = vmatpush2.bf16.msra.mxu0 %v3031_v53  ;;  %v3096_v53 = vld [vmem:[#allocation8 + $0x3ac] ss:$16 sps:$4 sm:$0xff]  }
 0x174   :  { %1956 = vmatprep.subr.bf16.mxu0 %v3039_v54  ;;  %v3094_v54 = vld [vmem:[#allocation8 + $0x3a8] ss:$16 sps:$4 sm:$0xff]  }
 0x177   :  { %1957 = vmatpush2.bf16.msra.mxu0 %v3037_v55  ;;  %v3099_v55 = vld [vmem:[#allocation8 + $0x38c] ss:$16 sps:$4 sm:$0xff]  }
 0x178   :  { %1958 = vmatprep.subr.bf16.mxu0 %v3045_v56  ;;  %v3097_v56 = vld [vmem:[#allocation8 + $0x388] ss:$16 sps:$4 sm:$0xff]  }
 0x17b   :  { %1959 = vmatpush2.bf16.msra.mxu0 %v3043_v57  ;;  %v3102_v57 = vld [vmem:[#allocation8 + $0x36c] ss:$16 sps:$4 sm:$0xff]  }
 0x17c   :  { %1960 = vmatprep.subr.bf16.mxu0 %v3051_v59  ;;  %v3100_v59 = vld [vmem:[#allocation8 + $0x368] ss:$16 sps:$4 sm:$0xff]  }
 0x17e   :  { %v1006_v1 = vpop.f32.mrf.mxu0 }
 0x17f   :  { %v1047_v2 = vpop.f32.mrf.mxu1  ;;  %v1007_v3 = vadd.f32 %v1006_v1, %v241_v62  ;;  %1961 = vmatpush2.bf16.msra.mxu0 %v3049_v61  ;;  %v3105_v61 = vld [vmem:[#allocation8 + $0x34c] ss:$16 sps:$4 sm:$0xff]   ;;  %v3103_v62 = vld [vmem:[#allocation8 + $0x348] ss:$16 sps:$4 sm:$0xff]  }
 0x180   :  { %v1008_v5 = vpop.f32.mrf.mxu0  ;;  %1962 = vmatprep.subr.bf16.mxu0 %v3057_v63  ;;  %v3108_v63 = vld [vmem:[#allocation8 + $0x32c] ss:$16 sps:$4 sm:$0xff]  }
 0x181   :  { %v1049_v6 = vpop.f32.mrf.mxu1  ;;  %v1048_v10 = vadd.f32 %v1047_v2, %v1007_v3  ;;  %v1009_v11 = vadd.f32 %v1008_v5, %v245_v0  ;;  %v3106_v0 = vld [vmem:[#allocation8 + $0x328] ss:$16 sps:$4 sm:$0xff]   ;;  %v3111_v1 = vld [vmem:[#allocation8 + $0x30c] ss:$16 sps:$4 sm:$0xff]   ;;  %v3123_v3 = vld [vmem:[#allocation10 + $0x10] sm:$0xff]  }
 0x182   :  { %v1010_v12 = vpop.f32.mrf.mxu0  ;;  %v3109_v2 = vld [vmem:[#allocation8 + $0x308] ss:$16 sps:$4 sm:$0xff]  }
 0x183   :  { %v1051_v17 = vpop.f32.mrf.mxu1  ;;  %v1050_v18 = vadd.f32 %v1049_v6, %v1009_v11  ;;  %1963 = vmatpush2.bf16.msra.mxu0 %v3055_v4  ;;  %v1056_v20 = vmax.f32 %v1048_v10, 0.0  ;;  %v3124_v4 = vld [vmem:[#allocation10 + $0x48] sm:$0xff]   ;;  %v3126_v6 = vld [vmem:[#allocation10 + $0x40] sm:$0xff]   ;;  %v3128_v10 = vld [vmem:[#allocation10 + $0xf8] sm:$0xff]  }
 0x184   :  { %v1011_v8 = vpop.f32.mrf.mxu0  ;;  %1964 = vmatprep.subr.bf16.mxu0 %v3063_v7  ;;  %v3125_v5 = vld [vmem:[#allocation10 + $0x8] sm:$0xff]   ;;  %v3127_v7 = vld [vmem:[#allocation10] sm:$0xff]   ;;  %v3129_v11 = vld [vmem:[#allocation10 + $0xb8] sm:$0xff]  }
 0x185   :  { %v1052_v21 = vpop.f32.mrf.mxu1  ;;  %v1057_v15 = vmax.f32 %v1050_v18, 0.0  ;;  %v3372_v23 = vpack.c.bf16 %v1056_v20, %v1056_v20  ;;  %v3130_v12 = vld [vmem:[#allocation10 + $0xf0] sm:$0xff]   ;;  %v3132_v18 = vld [vmem:[#allocation10 + $0xe8] sm:$0xff]   ;;  %v3134_v20 = vld [vmem:[#allocation10 + $0xe0] sm:$0xff]  }
 0x186   :  { %v3131_v17 = vld [vmem:[#allocation10 + $0xb0] sm:$0xff]   ;;  %v3135_v8 = vld [vmem:[#allocation10 + $0xa0] sm:$0xff]   ;;  %v3136_v21 = vld [vmem:[#allocation10 + $0xd8] sm:$0xff]  }
 0x187   :  { %v1061_v9 = vpack.c.bf16 %v1057_v15, %v1057_v15  ;;  %1965 = vmatpush2.bf16.msra.mxu0 %v3061_v19  ;;  %v3133_v19 = vld [vmem:[#allocation10 + $0xa8] sm:$0xff]   ;;  %v3137_v15 = vld [vmem:[#allocation10 + $0x98] sm:$0xff]  }
 0x188   :  { %2674 = vmatprep.subr.bf16.mxu0 %v3112_v29  ;;  %v3143_v29 = vld [vmem:[#allocation10 + $0x80] sm:$0xff]  }
 0x189   :  { %1925 = vmatprep.mubr.bf16.mxu1 %v1061_v9 }
 0x18a   :  { %1967 = vmatmul.mubr.bf16.vlgmr.msra.gmra.mxu0 %v3361_v33  ;;  %1926 = vmatmul.mubr.bf16.vlgmr.msra.gmra.mxu1 %v3372_v23  ;;  %v3078_v33 = vld [vmem:[#allocation8 + $0x26c] ss:$16 sps:$4 sm:$0xff]  }
 0x18b   :  { %1976 = vmatpush1.bf16.msra.mxu1 %v3064_v22  ;;  %2007 = vmatprep.mubr.bf16.mxu1 %v1061_v9  ;;  %v3138_v9 = vld [vmem:[#allocation10 + $0xd0] sm:$0xff]  }
 0x18c   :  { %1977 = vmatprep.subr.bf16.mxu1 %v3069_v24  ;;  %2675 = vmatpush3.bf16.msra.mxu0 %v3113_v30  ;;  %v3139_v22 = vld [vmem:[#allocation10 + $0x90] sm:$0xff]   ;;  %v3140_v24 = vld [vmem:[#allocation10 + $0xc8] sm:$0xff]  }
 0x18d   :  { %2676 = vmatprep.subr.bf16.mxu0 %v3114_v31  ;;  %v1190_v31 = vld [vmem:[%s3398_s4] sm:$0xf] }
 0x18f   :  { %1978 = vmatpush1.bf16.msra.mxu1 %v3067_v25  ;;  %v3141_v25 = vld [vmem:[#allocation10 + $0x88] sm:$0xff]  }
 0x190   :  { %1979 = vmatprep.subr.bf16.mxu1 %v3072_v26  ;;  %2677 = vmatpush3.bf16.msra.mxu0 %v3115_v34  ;;  %v1199_v34 = vrot.slane %v1190_v31, %v236_v16  ;;  %v1207_v16 = vrot.slane %v1190_v31, %v244_v60  ;;  %v2641_v60 = vld [vmem:[%s3400_s6] ss:$0 sm:$0xff] }
 0x191   :  { %2678 = vmatprep.subr.bf16.mxu0 %v3116_v35 }
 0x193   :  { %1980 = vmatpush1.bf16.msra.mxu1 %v3070_v27 }
 0x194   :  { %1981 = vmatprep.subr.bf16.mxu1 %v3075_v28  ;;  %2679 = vmatpush3.bf16.msra.mxu0 %v3117_v37  ;;  %v3142_v28 = vld [vmem:[#allocation10 + $0xc0] sm:$0xff]  }
 0x195   :  { %2680 = vmatprep.subr.bf16.mxu0 %v3118_v39 }
 0x197   :  { %1982 = vmatpush1.bf16.msra.mxu1 %v3073_v32  ;;  %v1195_v32 = vrot.slane %v1190_v31, %v232_v14  ;;  %v1203_v14 = vrot.slane %v1190_v31, %v240_v58 }
 0x198   :  { %1983 = vmatprep.subr.bf16.mxu1 %v3078_v33  ;;  %2681 = vmatpush3.bf16.msra.mxu0 %v3119_v41 }
 0x199   :  { %2682 = vmatprep.subr.bf16.mxu0 %v3120_v43 }
 0x19b   :  { %1984 = vmatpush1.bf16.msra.mxu1 %v3076_v36 }
 0x19c   :  { %1985 = vmatprep.subr.bf16.mxu1 %v3081_v38  ;;  %2683 = vmatpush3.bf16.msra.mxu0 %v3121_v45 }
 0x19d   :  { %2684 = vmatprep.subr.bf16.mxu0 %v3122_v47 }
 0x19f   :  { %1986 = vmatpush1.bf16.msra.mxu1 %v3079_v40 }
 0x1a0   :  { %1987 = vmatprep.subr.bf16.mxu1 %v3084_v42  ;;  %2685 = vmatpush3.bf16.msra.mxu0 %v3123_v3 }
 0x1a1   :  { %2686 = vmatprep.subr.bf16.mxu0 %v3124_v4 }
 0x1a3   :  { %1988 = vmatpush1.bf16.msra.mxu1 %v3082_v44 }
 0x1a4   :  { %1989 = vmatprep.subr.bf16.mxu1 %v3087_v46  ;;  %2687 = vmatpush3.bf16.msra.mxu0 %v3125_v5 }
 0x1a5   :  { %2688 = vmatprep.subr.bf16.mxu0 %v3126_v6 }
 0x1a7   :  { %1990 = vmatpush1.bf16.msra.mxu1 %v3085_v48 }
 0x1a8   :  { %1991 = vmatprep.subr.bf16.mxu1 %v3090_v49  ;;  %2689 = vmatpush3.bf16.msra.mxu0 %v3127_v7 }
 0x1ab   :  { %1992 = vmatpush2.bf16.msra.mxu1 %v3088_v50 }
 0x1ac   :  { %1993 = vmatprep.subr.bf16.mxu1 %v3093_v51 }
 0x1af   :  { %1994 = vmatpush2.bf16.msra.mxu1 %v3091_v52 }
 0x1b0   :  { %1995 = vmatprep.subr.bf16.mxu1 %v3096_v53 }
 0x1b3   :  { %1996 = vmatpush2.bf16.msra.mxu1 %v3094_v54 }
 0x1b4   :  { %1997 = vmatprep.subr.bf16.mxu1 %v3099_v55 }
 0x1b7   :  { %1998 = vmatpush2.bf16.msra.mxu1 %v3097_v56 }
 0x1b8   :  { %1999 = vmatprep.subr.bf16.mxu1 %v3102_v57 }
 0x1bb   :  { %2000 = vmatpush2.bf16.msra.mxu1 %v3100_v59 }
 0x1bc   :  { %2001 = vmatprep.subr.bf16.mxu1 %v3105_v61 }
 0x1bf   :  { %2002 = vmatpush2.bf16.msra.mxu1 %v3103_v62 }
 0x1c0   :  { %2003 = vmatprep.subr.bf16.mxu1 %v3108_v63 }
 0x1c3   :  { %2004 = vmatpush2.bf16.msra.mxu1 %v3106_v0 }
 0x1c4   :  { %2005 = vmatprep.subr.bf16.mxu1 %v3111_v1 }
 0x1c7   :  { %2006 = vmatpush2.bf16.msra.mxu1 %v3109_v2 }
 0x1c8   :  { %2696 = vmatprep.subr.bf16.mxu1 %v3128_v10 }
 0x1ca   :  { %2008 = vmatmul.mubr.bf16.vlgmr.msra.gmra.mxu1 %v3372_v23 }
 0x1cb   :  { %2697 = vmatpush3.bf16.msra.mxu1 %v3129_v11 }
 0x1cc   :  { %2698 = vmatprep.subr.bf16.mxu1 %v3130_v12 }
 0x1cf   :  { %2699 = vmatpush3.bf16.msra.mxu1 %v3131_v17 }
 0x1d0   :  { %2700 = vmatprep.subr.bf16.mxu1 %v3132_v18 }
 0x1d3   :  { %2701 = vmatpush3.bf16.msra.mxu1 %v3133_v19 }
 0x1d4   :  { %2702 = vmatprep.subr.bf16.mxu1 %v3134_v20 }
 0x1d7   :  { %2703 = vmatpush3.bf16.msra.mxu1 %v3135_v8 }
 0x1d8   :  { %2704 = vmatprep.subr.bf16.mxu1 %v3136_v21 }
 0x1db   :  { %2705 = vmatpush3.bf16.msra.mxu1 %v3137_v15 }
 0x1dc   :  { %2706 = vmatprep.subr.bf16.mxu1 %v3138_v9 }
 0x1df   :  { %2707 = vmatpush3.bf16.msra.mxu1 %v3139_v22 }
 0x1e0   :  { %2708 = vmatprep.subr.bf16.mxu1 %v3140_v24 }
 0x1e3   :  { %2709 = vmatpush3.bf16.msra.mxu1 %v3141_v25 }
 0x1e4   :  { %2710 = vmatprep.subr.bf16.mxu1 %v3142_v28 }
 0x1e7   :  { %2711 = vmatpush3.bf16.msra.mxu1 %v3143_v29 }
 0x20a   :  { %v1886_v23 = vpop.f32.mrf.mxu0 }
 0x20b   :  { %v1887_v33 = vadd.f32 %v1886_v23, %v1195_v32 }
 0x20c   :  { %v1888_v26 = vpop.f32.mrf.mxu0 }
 0x20d   :  { %v1889_v37 = vadd.f32 %v1888_v26, %v1199_v34 }
 0x20e   :  { %v1890_v27 = vpop.f32.mrf.mxu0 }
 0x210   :  { %v1891_v30 = vpop.f32.mrf.mxu0 }
 0x24a   :  { %v1968_v35 = vpop.f32.mrf.mxu0  ;;  %v1927_v36 = vpop.f32.mrf.mxu1 }
 0x24b   :  { %v1928_v38 = vadd.f32 %v1927_v36, %v1887_v33  ;;  %v1969_v50 = vadd.f32 %v1968_v35, %v1203_v14 }
 0x24c   :  { %v1970_v39 = vpop.f32.mrf.mxu0  ;;  %v1929_v40 = vpop.f32.mrf.mxu1 }
 0x24d   :  { %v1930_v41 = vadd.f32 %v1929_v40, %v1889_v37  ;;  %v2016_v42 = vmax.f32 %v1928_v38, 0.0  ;;  %v1971_v52 = vadd.f32 %v1970_v39, %v1207_v16 }
 0x24e   :  { %v1972_v43 = vpop.f32.mrf.mxu0  ;;  %v1931_v44 = vpop.f32.mrf.mxu1 }
 0x24f   :  { %v2017_v45 = vmax.f32 %v1930_v41, 0.0  ;;  %v2020_v49 = vpack.c.bf16 %v2016_v42, %v2016_v42 }
 0x250   :  { %v1973_v46 = vpop.f32.mrf.mxu0  ;;  %v1932_v47 = vpop.f32.mrf.mxu1 }
 0x251   :  { %v2021_v48 = vpack.c.bf16 %v2017_v45, %v2017_v45 }
 0x253   :  { %2319 = vmatprep.mubr.bf16.mxu0 %v2021_v48 }
 0x254   :  { %2320 = vmatmul.mubr.bf16.vlgmr.msra.gmra.mxu0 %v2020_v49 }
 0x28a   :  { %v2009_v51 = vpop.f32.mrf.mxu1 }
 0x28b   :  { %v2010_v53 = vadd.f32 %v2009_v51, %v1969_v50 }
 0x28c   :  { %v2011_v54 = vpop.f32.mrf.mxu1 }
 0x28d   :  { %v2012_v55 = vadd.f32 %v2011_v54, %v1971_v52  ;;  %v2018_v56 = vmax.f32 %v2010_v53, 0.0 }
 0x28e   :  { %v2013_v57 = vpop.f32.mrf.mxu1 }
 0x28f   :  { %v2019_v59 = vmax.f32 %v2012_v55, 0.0  ;;  %v2022_v63 = vpack.c.bf16 %v2018_v56, %v2018_v56 }
 0x290   :  { %v2014_v61 = vpop.f32.mrf.mxu1 }
 0x291   :  { %v2023_v62 = vpack.c.bf16 %v2019_v59, %v2019_v59 }
 0x293   :  { %2359 = vmatprep.mubr.bf16.mxu1 %v2023_v62 }
 0x294   :  { %2360 = vmatmul.mubr.bf16.vlgmr.msra.gmra.mxu1 %v2022_v63 }
 0x314   :  { %v2690_v0 = vpop.f32.mrf.mxu0 }
 0x316   :  { %v2691_v1 = vpop.f32.mrf.mxu0 }
 0x317   :  { %v2692_v13 = vadd.f32 %v2691_v1, %v2690_v0 }
 0x318   :  { %v2693_v58 = vpop.f32.mrf.mxu0 }
 0x319   :  { %v2322_v5 = vadd.f32 %v2692_v13, %v2641_v60 }
 0x31a   :  { %v2694_v2 = vpop.f32.mrf.mxu0 }
 0x354   :  { %v2712_v3 = vpop.f32.mrf.mxu1 }
 0x356   :  { %v2713_v4 = vpop.f32.mrf.mxu1 }
 0x357   :  { %v2714_v6 = vadd.f32 %v2713_v4, %v2712_v3 }
 0x358   :  { %v2715_v7 = vpop.f32.mrf.mxu1 }
 0x359   :  { %v2362_v10 = vadd.f32 %v2714_v6, %v2322_v5 }
 0x35a   :  { %v2716_v11 = vpop.f32.mrf.mxu1 }
 0x35b   :  { %2367 = vst [vmem:[#allocation11] sm:$0xff] %v2362_v10 }
 0x35c   :  { %3255 = shalt.err (!%p3252_p1)
}
 0x35d   :  { %2377 = dma.vmem_to_hbm [thread:$0]  %s2375_s29, 128, %s3401_s7, [#allocation4]  }
 0x35e   :  { %3270 = dma.done.wait [#allocation4], 128  }
 0x35f   :  { %3271 = vsyncadd [#allocation4], 4294967168 }
 0x360   :  { %2381 = vsyncpa [#allocation3], 1 }
 0x361   :  { %2382 = vsyncpa [#allocation6], 1 }
 0x362   :  { %2383 = vsyncpa [#allocation9], 1 }
 0x363   :  { %2384 = vsyncpa [#allocation4], 1 }

// kernel: _forward_impl.1
= control target key start
LH: loop header
LB: loop body
LE: loop exit
PB: predicated region body
PF: predicated region fallthrough
CT: control target
= control target key end

     0   :  { %12 = vsyncpa [#allocation3], 0  ;;  %s3298_s0 = inlined_call_operand.vmem [shape: f32[8,512], index: 0, kind: input, shape index: {}]   ;;  %s3299_s1 = inlined_call_operand.hbm [shape: bf16[512,512], index: 1, kind: input, shape index: {}]   ;;  %s3300_s2 = inlined_call_operand.vmem [shape: f32[1,512], index: 2, kind: input, shape index: {}]   ;;  %s3301_s3 = inlined_call_operand.hbm [shape: bf16[512,512], index: 3, kind: input, shape index: {}]   ;;  %s3302_s4 = inlined_call_operand.vmem [shape: f32[1,512], index: 4, kind: input, shape index: {}]   ;;  %s3303_s5 = inlined_call_operand.hbm [shape: bf16[512,128], index: 5, kind: input, shape index: {}]   ;;  %s3304_s6 = inlined_call_operand.vmem [shape: f32[1,128], index: 6, kind: input, shape index: {}]   ;;  %s3305_s7 = inlined_call_operand.vmem [shape: f32[8,128], index: 7, kind: output, shape index: {}]  }
   0x1   :  { %13 = vsyncpa [#allocation5], 0  ;;  %s3170_s24 = smov [#allocation4]   ;;  %s3171_s26 = smov [#allocation2]  }
   0x2   :  { %s35_s25 = sshll.u32 %s3170_s24, 4  ;;  %s21_s27 = sshll.u32 %s3171_s26, 4  ;;  %s36_s25 = int_to_ptr.vmem [resolvable:$true] %s35_s25  ;;  %s22_s27 = int_to_ptr.vmem [resolvable:$true] %s21_s27 }
   0x3   :  { %s3114_s28 = scalar_lea.vmem %s36_s25, 16384  ;;  %p3119_p1 = scmp.lt.s32.totalorder %s36_s25, %s36_s25 }
   0x4   :  { %p3115_p0 = scmp.ne.s32.totalorder %s36_s25, %s3114_s28  ;;  %p3120_p2 = scmp.lt.s32.totalorder %s3114_s28, %s3114_s28 }
   0x6   :  { %p3121_p3 = por %p3120_p2, %p3119_p1 }
   0x8   :  { %p3122_p4 = pnand %p3121_p3, %p3115_p0 }
   0xa   :  { %3125 = shalt.err (!%p3122_p4)
}
   0xb   :  { %s3172_s29 = smov 256   ;;  %s3173_s30 = smov 16  }
   0xc   :  { %41 = dma.hbm_to_vmem [thread:$0]  %s3301_s3, 16384, %s36_s25, [#allocation5], %s3172_s29, %s3172_s29, %s3173_s30  }
   0xd   :  { %s3134_s10 = scalar_lea.vmem %s22_s27, 16384  ;;  %p3139_p6 = scmp.lt.s32.totalorder %s22_s27, %s22_s27 }
   0xe   :  { %p3135_p5 = scmp.ne.s32.totalorder %s22_s27, %s3134_s10  ;;  %p3140_p7 = scmp.lt.s32.totalorder %s3134_s10, %s3134_s10 }
  0x10   :  { %p3141_p8 = por %p3140_p7, %p3139_p6 }
  0x12   :  { %p3142_p9 = pnand %p3141_p8, %p3135_p5 }
  0x14   :  { %3145 = shalt.err (!%p3142_p9)
}
  0x15   :  { %27 = dma.hbm_to_vmem [thread:$0]  %s3299_s1, 16384, %s22_s27, [#allocation3], %s3172_s29, %s3172_s29, %s3173_s30  }
  0x16   :  { %s3174_s13 = smov [#allocation6]  }
  0x17   :  { %s49_s14 = sshll.u32 %s3174_s13, 4  ;;  %s50_s14 = int_to_ptr.vmem [resolvable:$true] %s49_s14 }
  0x18   :  { %s3154_s15 = scalar_lea.vmem %s50_s14, 4096  ;;  %p3159_p11 = scmp.lt.s32.totalorder %s50_s14, %s50_s14 }
  0x19   :  { %p3155_p10 = scmp.ne.s32.totalorder %s50_s14, %s3154_s15  ;;  %p3160_p12 = scmp.lt.s32.totalorder %s3154_s15, %s3154_s15 }
  0x1b   :  { %p3161_p13 = por %p3160_p12, %p3159_p11 }
  0x1d   :  { %p3162_p0 = pnand %p3161_p13, %p3155_p10 }
  0x1f   :  { %3165 = shalt.err (!%p3162_p0)
}
  0x20   :  { %s3175_s3 = smov 64   ;;  %s3176_s16 = smov 4  }
  0x21   :  { %55 = dma.hbm_to_vmem [thread:$0]  %s3303_s5, 4096, %s50_s14, [#allocation5], %s3175_s3, %s3175_s3, %s3176_s16  }
  0x22   :  { %3166 = dma.done.wait [#allocation3], 16384  }
  0x23   :  { %3167 = vsyncadd [#allocation3], 4294950912 }
  0x24   :  { %3168 = dma.done.wait [#allocation5], 20480  }
  0x25   :  { %3169 = vsyncadd [#allocation5], 4294946816  ;;  %v2690_v0 = vld [vmem:[#allocation2 + $0xe4] ss:$16 sps:$4 sm:$0xff]   ;;  %v2694_v2 = vld [vmem:[#allocation2 + $0xe0] ss:$16 sps:$4 sm:$0xff]  }
  0x26   :  { %v2692_v1 = vld [vmem:[#allocation2 + $0x2e4] ss:$16 sps:$4 sm:$0xff]   ;;  %866 = vmatprep.subr.bf16.mxu0 %v2690_v0  ;;  %v2695_v3 = vld [vmem:[#allocation2 + $0x2e0] ss:$16 sps:$4 sm:$0xff]   ;;  %v69_v46 = vld [vmem:[%s3298_s0 + $0x8] sm:$0xff] }
  0x27   :  { %907 = vmatprep.subr.bf16.mxu1 %v2692_v1  ;;  %v2696_v4 = vld [vmem:[#allocation2 + $0xc4] ss:$16 sps:$4 sm:$0xff]   ;;  %867 = vmatpush1.bf16.msra.mxu0 %v2694_v2  ;;  %v2700_v6 = vld [vmem:[#allocation2 + $0xc0] ss:$16 sps:$4 sm:$0xff]   ;;  %v3229_v49 = vpack.c.bf16 %v69_v46, %v69_v46  ;;  %v71_v50 = vld [vmem:[%s3298_s0 + $0x18] sm:$0xff] }
  0x28   :  { %908 = vmatpush1.bf16.msra.mxu1 %v2695_v3  ;;  %v2698_v5 = vld [vmem:[#allocation2 + $0x2c4] ss:$16 sps:$4 sm:$0xff]   ;;  %868 = vmatprep.subr.bf16.mxu0 %v2696_v4  ;;  %v2701_v7 = vld [vmem:[#allocation2 + $0x2c0] ss:$16 sps:$4 sm:$0xff]   ;;  %v75_v52 = vpack.c.bf16 %v71_v50, %v71_v50  ;;  %v2840_v46 = vld [vmem:[#allocation2 + $0x1c8] ss:$16 sps:$4 sm:$0xff]  }
  0x29   :  { %909 = vmatprep.subr.bf16.mxu1 %v2698_v5  ;;  %v2702_v8 = vld [vmem:[#allocation2 + $0xa4] ss:$16 sps:$4 sm:$0xff]   ;;  %v2706_v10 = vld [vmem:[#allocation2 + $0xa0] ss:$16 sps:$4 sm:$0xff]   ;;  %898 = vmatprep.mubr.bf16.mxu0 %v3229_v49  ;;  %v2846_v50 = vld [vmem:[#allocation2 + $0x1a8] ss:$16 sps:$4 sm:$0xff]  }
  0x2a   :  { %v2704_v9 = vld [vmem:[#allocation2 + $0x2a4] ss:$16 sps:$4 sm:$0xff]   ;;  %v2707_v11 = vld [vmem:[#allocation2 + $0x2a0] ss:$16 sps:$4 sm:$0xff]   ;;  %939 = vmatprep.mubr.bf16.mxu1 %v75_v52 }
  0x2b   :  { %869 = vmatpush1.bf16.msra.mxu0 %v2700_v6  ;;  %v2708_v12 = vld [vmem:[#allocation2 + $0x84] ss:$16 sps:$4 sm:$0xff]   ;;  %v2712_v14 = vld [vmem:[#allocation2 + $0x80] ss:$16 sps:$4 sm:$0xff]   ;;  %v2788_v6 = vld [vmem:[#allocation2 + $0xec] ss:$16 sps:$4 sm:$0xff]  }
  0x2c   :  { %910 = vmatpush1.bf16.msra.mxu1 %v2701_v7  ;;  %870 = vmatprep.subr.bf16.mxu0 %v2702_v8  ;;  %v2710_v13 = vld [vmem:[#allocation2 + $0x284] ss:$16 sps:$4 sm:$0xff]   ;;  %v2713_v15 = vld [vmem:[#allocation2 + $0x280] ss:$16 sps:$4 sm:$0xff]   ;;  %v2791_v7 = vld [vmem:[#allocation2 + $0x2ec] ss:$16 sps:$4 sm:$0xff]  }
  0x2d   :  { %911 = vmatprep.subr.bf16.mxu1 %v2704_v9  ;;  %v2714_v16 = vld [vmem:[#allocation2 + $0x64] ss:$16 sps:$4 sm:$0xff]   ;;  %v2718_v18 = vld [vmem:[#allocation2 + $0x60] ss:$16 sps:$4 sm:$0xff]  }
  0x2e   :  { %v2716_v17 = vld [vmem:[#allocation2 + $0x264] ss:$16 sps:$4 sm:$0xff]   ;;  %v2719_v19 = vld [vmem:[#allocation2 + $0x260] ss:$16 sps:$4 sm:$0xff]  }
  0x2f   :  { %871 = vmatpush1.bf16.msra.mxu0 %v2706_v10  ;;  %v2720_v20 = vld [vmem:[#allocation2 + $0x44] ss:$16 sps:$4 sm:$0xff]   ;;  %v2724_v22 = vld [vmem:[#allocation2 + $0x40] ss:$16 sps:$4 sm:$0xff]   ;;  %v2786_v10 = vld [vmem:[#allocation2 + $0xe8] ss:$16 sps:$4 sm:$0xff]  }
  0x30   :  { %912 = vmatpush1.bf16.msra.mxu1 %v2707_v11  ;;  %872 = vmatprep.subr.bf16.mxu0 %v2708_v12  ;;  %v2722_v21 = vld [vmem:[#allocation2 + $0x244] ss:$16 sps:$4 sm:$0xff]   ;;  %v2725_v23 = vld [vmem:[#allocation2 + $0x240] ss:$16 sps:$4 sm:$0xff]   ;;  %v2789_v11 = vld [vmem:[#allocation2 + $0x2e8] ss:$16 sps:$4 sm:$0xff]  }
  0x31   :  { %913 = vmatprep.subr.bf16.mxu1 %v2710_v13  ;;  %v2726_v24 = vld [vmem:[#allocation2 + $0x24] ss:$16 sps:$4 sm:$0xff]   ;;  %v2730_v26 = vld [vmem:[#allocation2 + $0x20] ss:$16 sps:$4 sm:$0xff]   ;;  %v2794_v12 = vld [vmem:[#allocation2 + $0xcc] ss:$16 sps:$4 sm:$0xff]  }
  0x32   :  { %v2728_v25 = vld [vmem:[#allocation2 + $0x224] ss:$16 sps:$4 sm:$0xff]   ;;  %v2731_v27 = vld [vmem:[#allocation2 + $0x220] ss:$16 sps:$4 sm:$0xff]   ;;  %v2797_v13 = vld [vmem:[#allocation2 + $0x2cc] ss:$16 sps:$4 sm:$0xff]  }
  0x33   :  { %873 = vmatpush1.bf16.msra.mxu0 %v2712_v14  ;;  %v2732_v28 = vld [vmem:[#allocation2 + $0x4] ss:$16 sps:$4 sm:$0xff]   ;;  %v2736_v30 = vld [vmem:[#allocation2] ss:$16 sps:$4 sm:$0xff]   ;;  %v2792_v14 = vld [vmem:[#allocation2 + $0xc8] ss:$16 sps:$4 sm:$0xff]  }
  0x34   :  { %914 = vmatpush1.bf16.msra.mxu1 %v2713_v15  ;;  %874 = vmatprep.subr.bf16.mxu0 %v2714_v16  ;;  %v2734_v29 = vld [vmem:[#allocation2 + $0x204] ss:$16 sps:$4 sm:$0xff]   ;;  %v2737_v31 = vld [vmem:[#allocation2 + $0x200] ss:$16 sps:$4 sm:$0xff]   ;;  %v2795_v15 = vld [vmem:[#allocation2 + $0x2c8] ss:$16 sps:$4 sm:$0xff]  }
  0x35   :  { %915 = vmatprep.subr.bf16.mxu1 %v2716_v17  ;;  %v2738_v32 = vld [vmem:[#allocation2 + $0x1e4] ss:$16 sps:$4 sm:$0xff]   ;;  %v2742_v34 = vld [vmem:[#allocation2 + $0x1e0] ss:$16 sps:$4 sm:$0xff]   ;;  %v2800_v16 = vld [vmem:[#allocation2 + $0xac] ss:$16 sps:$4 sm:$0xff]  }
  0x36   :  { %v2740_v33 = vld [vmem:[#allocation2 + $0x3e4] ss:$16 sps:$4 sm:$0xff]   ;;  %v2743_v35 = vld [vmem:[#allocation2 + $0x3e0] ss:$16 sps:$4 sm:$0xff]   ;;  %v2803_v17 = vld [vmem:[#allocation2 + $0x2ac] ss:$16 sps:$4 sm:$0xff]  }
  0x37   :  { %875 = vmatpush1.bf16.msra.mxu0 %v2718_v18  ;;  %v2744_v36 = vld [vmem:[#allocation2 + $0x1c4] ss:$16 sps:$4 sm:$0xff]   ;;  %v2748_v38 = vld [vmem:[#allocation2 + $0x1c0] ss:$16 sps:$4 sm:$0xff]   ;;  %v2798_v18 = vld [vmem:[#allocation2 + $0xa8] ss:$16 sps:$4 sm:$0xff]  }
  0x38   :  { %916 = vmatpush1.bf16.msra.mxu1 %v2719_v19  ;;  %876 = vmatprep.subr.bf16.mxu0 %v2720_v20  ;;  %v2746_v37 = vld [vmem:[#allocation2 + $0x3c4] ss:$16 sps:$4 sm:$0xff]   ;;  %v2749_v39 = vld [vmem:[#allocation2 + $0x3c0] ss:$16 sps:$4 sm:$0xff]   ;;  %v2801_v19 = vld [vmem:[#allocation2 + $0x2a8] ss:$16 sps:$4 sm:$0xff]  }
  0x39   :  { %917 = vmatprep.subr.bf16.mxu1 %v2722_v21  ;;  %v2750_v40 = vld [vmem:[#allocation2 + $0x1a4] ss:$16 sps:$4 sm:$0xff]   ;;  %v2754_v42 = vld [vmem:[#allocation2 + $0x1a0] ss:$16 sps:$4 sm:$0xff]   ;;  %v2806_v20 = vld [vmem:[#allocation2 + $0x8c] ss:$16 sps:$4 sm:$0xff]  }
  0x3a   :  { %v2752_v41 = vld [vmem:[#allocation2 + $0x3a4] ss:$16 sps:$4 sm:$0xff]   ;;  %v2755_v43 = vld [vmem:[#allocation2 + $0x3a0] ss:$16 sps:$4 sm:$0xff]   ;;  %v2809_v21 = vld [vmem:[#allocation2 + $0x28c] ss:$16 sps:$4 sm:$0xff]  }
  0x3b   :  { %877 = vmatpush1.bf16.msra.mxu0 %v2724_v22  ;;  %v2756_v44 = vld [vmem:[#allocation2 + $0x184] ss:$16 sps:$4 sm:$0xff]   ;;  %v2760_v47 = vld [vmem:[#allocation2 + $0x180] ss:$16 sps:$4 sm:$0xff]   ;;  %v2804_v22 = vld [vmem:[#allocation2 + $0x88] ss:$16 sps:$4 sm:$0xff]  }
  0x3c   :  { %918 = vmatpush1.bf16.msra.mxu1 %v2725_v23  ;;  %878 = vmatprep.subr.bf16.mxu0 %v2726_v24  ;;  %v2758_v45 = vld [vmem:[#allocation2 + $0x384] ss:$16 sps:$4 sm:$0xff]   ;;  %v2761_v48 = vld [vmem:[#allocation2 + $0x380] ss:$16 sps:$4 sm:$0xff]   ;;  %v2807_v23 = vld [vmem:[#allocation2 + $0x288] ss:$16 sps:$4 sm:$0xff]  }
  0x3d   :  { %919 = vmatprep.subr.bf16.mxu1 %v2728_v25  ;;  %v2762_v51 = vld [vmem:[#allocation2 + $0x164] ss:$16 sps:$4 sm:$0xff]   ;;  %v2766_v54 = vld [vmem:[#allocation2 + $0x160] ss:$16 sps:$4 sm:$0xff]   ;;  %v2812_v24 = vld [vmem:[#allocation2 + $0x6c] ss:$16 sps:$4 sm:$0xff]  }
  0x3e   :  { %v2764_v53 = vld [vmem:[#allocation2 + $0x364] ss:$16 sps:$4 sm:$0xff]   ;;  %v2767_v55 = vld [vmem:[#allocation2 + $0x360] ss:$16 sps:$4 sm:$0xff]   ;;  %v2815_v25 = vld [vmem:[#allocation2 + $0x26c] ss:$16 sps:$4 sm:$0xff]  }
  0x3f   :  { %879 = vmatpush1.bf16.msra.mxu0 %v2730_v26  ;;  %v2768_v56 = vld [vmem:[#allocation2 + $0x144] ss:$16 sps:$4 sm:$0xff]   ;;  %v2772_v58 = vld [vmem:[#allocation2 + $0x140] ss:$16 sps:$4 sm:$0xff]   ;;  %v2810_v26 = vld [vmem:[#allocation2 + $0x68] ss:$16 sps:$4 sm:$0xff]  }
  0x40   :  { %920 = vmatpush1.bf16.msra.mxu1 %v2731_v27  ;;  %880 = vmatprep.subr.bf16.mxu0 %v2732_v28  ;;  %v2770_v57 = vld [vmem:[#allocation2 + $0x344] ss:$16 sps:$4 sm:$0xff]   ;;  %v2773_v59 = vld [vmem:[#allocation2 + $0x340] ss:$16 sps:$4 sm:$0xff]   ;;  %v2813_v27 = vld [vmem:[#allocation2 + $0x268] ss:$16 sps:$4 sm:$0xff]  }
  0x41   :  { %921 = vmatprep.subr.bf16.mxu1 %v2734_v29  ;;  %v2774_v60 = vld [vmem:[#allocation2 + $0x124] ss:$16 sps:$4 sm:$0xff]   ;;  %v2778_v62 = vld [vmem:[#allocation2 + $0x120] ss:$16 sps:$4 sm:$0xff]   ;;  %v2818_v28 = vld [vmem:[#allocation2 + $0x4c] ss:$16 sps:$4 sm:$0xff]  }
  0x42   :  { %v2776_v61 = vld [vmem:[#allocation2 + $0x324] ss:$16 sps:$4 sm:$0xff]   ;;  %v2779_v63 = vld [vmem:[#allocation2 + $0x320] ss:$16 sps:$4 sm:$0xff]   ;;  %v2821_v29 = vld [vmem:[#allocation2 + $0x24c] ss:$16 sps:$4 sm:$0xff]  }
  0x43   :  { %881 = vmatpush1.bf16.msra.mxu0 %v2736_v30  ;;  %v2780_v0 = vld [vmem:[#allocation2 + $0x104] ss:$16 sps:$4 sm:$0xff]   ;;  %v2784_v2 = vld [vmem:[#allocation2 + $0x100] ss:$16 sps:$4 sm:$0xff]   ;;  %v2816_v30 = vld [vmem:[#allocation2 + $0x48] ss:$16 sps:$4 sm:$0xff]  }
  0x44   :  { %922 = vmatpush1.bf16.msra.mxu1 %v2737_v31  ;;  %882 = vmatprep.subr.bf16.mxu0 %v2738_v32  ;;  %v2782_v1 = vld [vmem:[#allocation2 + $0x304] ss:$16 sps:$4 sm:$0xff]   ;;  %v2785_v3 = vld [vmem:[#allocation2 + $0x300] ss:$16 sps:$4 sm:$0xff]   ;;  %v2819_v31 = vld [vmem:[#allocation2 + $0x248] ss:$16 sps:$4 sm:$0xff]  }
  0x45   :  { %923 = vmatprep.subr.bf16.mxu1 %v2740_v33  ;;  %v68_v4 = vld [vmem:[%s3298_s0] sm:$0xff]  ;;  %v70_v5 = vld [vmem:[%s3298_s0 + $0x10] sm:$0xff]  ;;  %v2824_v32 = vld [vmem:[#allocation2 + $0x2c] ss:$16 sps:$4 sm:$0xff]  }
  0x46   :  { %v3241_v8 = vpack.c.bf16 %v68_v4, %v68_v4  ;;  %v3243_v9 = vpack.c.bf16 %v70_v5, %v70_v5  ;;  %v2827_v33 = vld [vmem:[#allocation2 + $0x22c] ss:$16 sps:$4 sm:$0xff]  }
  0x47   :  { %883 = vmatpush2.bf16.msra.mxu0 %v2742_v34  ;;  %v2822_v34 = vld [vmem:[#allocation2 + $0x28] ss:$16 sps:$4 sm:$0xff]   ;;  %v2878_v4 = vld [vmem:[#allocation2 + $0x10c] ss:$16 sps:$4 sm:$0xff]  }
  0x48   :  { %924 = vmatpush2.bf16.msra.mxu1 %v2743_v35  ;;  %884 = vmatprep.subr.bf16.mxu0 %v2744_v36  ;;  %v2825_v35 = vld [vmem:[#allocation2 + $0x228] ss:$16 sps:$4 sm:$0xff]   ;;  %v2830_v36 = vld [vmem:[#allocation2 + $0xc] ss:$16 sps:$4 sm:$0xff]  }
  0x49   :  { %925 = vmatprep.subr.bf16.mxu1 %v2746_v37  ;;  %v2833_v37 = vld [vmem:[#allocation2 + $0x20c] ss:$16 sps:$4 sm:$0xff]  }
  0x4a   :  { %v2881_v5 = vld [vmem:[#allocation2 + $0x30c] ss:$16 sps:$4 sm:$0xff]  }
  0x4b   :  { %885 = vmatpush2.bf16.msra.mxu0 %v2748_v38  ;;  %v2828_v38 = vld [vmem:[#allocation2 + $0x8] ss:$16 sps:$4 sm:$0xff]  }
  0x4c   :  { %926 = vmatpush2.bf16.msra.mxu1 %v2749_v39  ;;  %886 = vmatprep.subr.bf16.mxu0 %v2750_v40  ;;  %v2831_v39 = vld [vmem:[#allocation2 + $0x208] ss:$16 sps:$4 sm:$0xff]   ;;  %v2836_v40 = vld [vmem:[#allocation2 + $0x1ec] ss:$16 sps:$4 sm:$0xff]  }
  0x4d   :  { %927 = vmatprep.subr.bf16.mxu1 %v2752_v41  ;;  %v2839_v41 = vld [vmem:[#allocation2 + $0x3ec] ss:$16 sps:$4 sm:$0xff]  }
  0x4f   :  { %887 = vmatpush2.bf16.msra.mxu0 %v2754_v42  ;;  %v2834_v42 = vld [vmem:[#allocation2 + $0x1e8] ss:$16 sps:$4 sm:$0xff]  }
  0x50   :  { %928 = vmatpush2.bf16.msra.mxu1 %v2755_v43  ;;  %888 = vmatprep.subr.bf16.mxu0 %v2756_v44  ;;  %v2837_v43 = vld [vmem:[#allocation2 + $0x3e8] ss:$16 sps:$4 sm:$0xff]   ;;  %v2842_v44 = vld [vmem:[#allocation2 + $0x1cc] ss:$16 sps:$4 sm:$0xff]  }
  0x51   :  { %929 = vmatprep.subr.bf16.mxu1 %v2758_v45  ;;  %v2845_v45 = vld [vmem:[#allocation2 + $0x3cc] ss:$16 sps:$4 sm:$0xff]  }
  0x53   :  { %889 = vmatpush2.bf16.msra.mxu0 %v2760_v47  ;;  %v2843_v47 = vld [vmem:[#allocation2 + $0x3c8] ss:$16 sps:$4 sm:$0xff]  }
  0x54   :  { %930 = vmatpush2.bf16.msra.mxu1 %v2761_v48  ;;  %890 = vmatprep.subr.bf16.mxu0 %v2762_v51  ;;  %v2848_v48 = vld [vmem:[#allocation2 + $0x1ac] ss:$16 sps:$4 sm:$0xff]   ;;  %v2849_v51 = vld [vmem:[#allocation2 + $0x3a8] ss:$16 sps:$4 sm:$0xff]  }
  0x55   :  { %931 = vmatprep.subr.bf16.mxu1 %v2764_v53  ;;  %v2857_v53 = vld [vmem:[#allocation2 + $0x38c] ss:$16 sps:$4 sm:$0xff]  }
  0x57   :  { %891 = vmatpush2.bf16.msra.mxu0 %v2766_v54  ;;  %v2852_v54 = vld [vmem:[#allocation2 + $0x188] ss:$16 sps:$4 sm:$0xff]  }
  0x58   :  { %932 = vmatpush2.bf16.msra.mxu1 %v2767_v55  ;;  %892 = vmatprep.subr.bf16.mxu0 %v2768_v56  ;;  %v2855_v55 = vld [vmem:[#allocation2 + $0x388] ss:$16 sps:$4 sm:$0xff]   ;;  %v2860_v56 = vld [vmem:[#allocation2 + $0x16c] ss:$16 sps:$4 sm:$0xff]  }
  0x59   :  { %933 = vmatprep.subr.bf16.mxu1 %v2770_v57  ;;  %v2863_v57 = vld [vmem:[#allocation2 + $0x36c] ss:$16 sps:$4 sm:$0xff]  }
  0x5b   :  { %893 = vmatpush2.bf16.msra.mxu0 %v2772_v58  ;;  %v2858_v58 = vld [vmem:[#allocation2 + $0x168] ss:$16 sps:$4 sm:$0xff]  }
  0x5c   :  { %934 = vmatpush2.bf16.msra.mxu1 %v2773_v59  ;;  %894 = vmatprep.subr.bf16.mxu0 %v2774_v60  ;;  %v2861_v59 = vld [vmem:[#allocation2 + $0x368] ss:$16 sps:$4 sm:$0xff]   ;;  %v2866_v60 = vld [vmem:[#allocation2 + $0x14c] ss:$16 sps:$4 sm:$0xff]  }
  0x5d   :  { %935 = vmatprep.subr.bf16.mxu1 %v2776_v61  ;;  %v2869_v61 = vld [vmem:[#allocation2 + $0x34c] ss:$16 sps:$4 sm:$0xff]  }
  0x5f   :  { %895 = vmatpush2.bf16.msra.mxu0 %v2778_v62  ;;  %v2864_v62 = vld [vmem:[#allocation2 + $0x148] ss:$16 sps:$4 sm:$0xff]  }
  0x60   :  { %936 = vmatpush2.bf16.msra.mxu1 %v2779_v63  ;;  %896 = vmatprep.subr.bf16.mxu0 %v2780_v0  ;;  %v2867_v63 = vld [vmem:[#allocation2 + $0x348] ss:$16 sps:$4 sm:$0xff]   ;;  %v2872_v0 = vld [vmem:[#allocation2 + $0x12c] ss:$16 sps:$4 sm:$0xff]  }
  0x61   :  { %937 = vmatprep.subr.bf16.mxu1 %v2782_v1  ;;  %v2875_v1 = vld [vmem:[#allocation2 + $0x32c] ss:$16 sps:$4 sm:$0xff]  }
  0x63   :  { %897 = vmatpush2.bf16.msra.mxu0 %v2784_v2  ;;  %v2870_v2 = vld [vmem:[#allocation2 + $0x128] ss:$16 sps:$4 sm:$0xff]  }
  0x64   :  { %938 = vmatpush2.bf16.msra.mxu1 %v2785_v3  ;;  %948 = vmatprep.subr.bf16.mxu0 %v2788_v6  ;;  %v2873_v3 = vld [vmem:[#allocation2 + $0x328] ss:$16 sps:$4 sm:$0xff]  }
  0x65   :  { %989 = vmatprep.subr.bf16.mxu1 %v2791_v7  ;;  %v2876_v6 = vld [vmem:[#allocation2 + $0x108] ss:$16 sps:$4 sm:$0xff]  }
  0x66   :  { %899 = vmatmul.mubr.bf16.vlgmr.msra.gmra.mxu0 %v3241_v8  ;;  %v2879_v7 = vld [vmem:[#allocation2 + $0x308] ss:$16 sps:$4 sm:$0xff]  }
  0x67   :  { %940 = vmatmul.mubr.bf16.vlgmr.msra.gmra.mxu1 %v3243_v9  ;;  %949 = vmatpush1.bf16.msra.mxu0 %v2786_v10  ;;  %v2884_v10 = vld [vmem:[#allocation4 + $0xe4] ss:$16 sps:$4 sm:$0xff]  }
  0x68   :  { %990 = vmatpush1.bf16.msra.mxu1 %v2789_v11  ;;  %950 = vmatprep.subr.bf16.mxu0 %v2794_v12  ;;  %v2882_v11 = vld [vmem:[#allocation4 + $0xe0] ss:$16 sps:$4 sm:$0xff]   ;;  %v2887_v12 = vld [vmem:[#allocation4 + $0xc4] ss:$16 sps:$4 sm:$0xff]  }
  0x69   :  { %991 = vmatprep.subr.bf16.mxu1 %v2797_v13  ;;  %980 = vmatprep.mubr.bf16.mxu0 %v3229_v49  ;;  %v2851_v49 = vld [vmem:[#allocation2 + $0x3ac] ss:$16 sps:$4 sm:$0xff]   ;;  %v2885_v13 = vld [vmem:[#allocation4 + $0xc0] ss:$16 sps:$4 sm:$0xff]  }
  0x6a   :  { %1021 = vmatprep.mubr.bf16.mxu1 %v75_v52  ;;  %v2854_v52 = vld [vmem:[#allocation2 + $0x18c] ss:$16 sps:$4 sm:$0xff]  }
  0x6b   :  { %951 = vmatpush1.bf16.msra.mxu0 %v2792_v14  ;;  %v2890_v14 = vld [vmem:[#allocation4 + $0xa4] ss:$16 sps:$4 sm:$0xff]  }
  0x6c   :  { %992 = vmatpush1.bf16.msra.mxu1 %v2795_v15  ;;  %952 = vmatprep.subr.bf16.mxu0 %v2800_v16  ;;  %v2888_v15 = vld [vmem:[#allocation4 + $0xa0] ss:$16 sps:$4 sm:$0xff]   ;;  %v2893_v16 = vld [vmem:[#allocation4 + $0x84] ss:$16 sps:$4 sm:$0xff]  }
  0x6d   :  { %993 = vmatprep.subr.bf16.mxu1 %v2803_v17  ;;  %v2891_v17 = vld [vmem:[#allocation4 + $0x80] ss:$16 sps:$4 sm:$0xff]  }
  0x6f   :  { %953 = vmatpush1.bf16.msra.mxu0 %v2798_v18  ;;  %v2932_v18 = vld [vmem:[#allocation4 + $0x2e4] ss:$16 sps:$4 sm:$0xff]  }
  0x70   :  { %994 = vmatpush1.bf16.msra.mxu1 %v2801_v19  ;;  %954 = vmatprep.subr.bf16.mxu0 %v2806_v20  ;;  %v2896_v19 = vld [vmem:[#allocation4 + $0x64] ss:$16 sps:$4 sm:$0xff]   ;;  %v2930_v20 = vld [vmem:[#allocation4 + $0x2e0] ss:$16 sps:$4 sm:$0xff]  }
  0x71   :  { %995 = vmatprep.subr.bf16.mxu1 %v2809_v21  ;;  %v2936_v21 = vld [vmem:[#allocation4 + $0x2c0] ss:$16 sps:$4 sm:$0xff]  }
  0x73   :  { %955 = vmatpush1.bf16.msra.mxu0 %v2804_v22  ;;  %v2899_v22 = vld [vmem:[#allocation4 + $0x44] ss:$16 sps:$4 sm:$0xff]  }
  0x74   :  { %996 = vmatpush1.bf16.msra.mxu1 %v2807_v23  ;;  %956 = vmatprep.subr.bf16.mxu0 %v2812_v24  ;;  %v2897_v23 = vld [vmem:[#allocation4 + $0x40] ss:$16 sps:$4 sm:$0xff]  }
  0x75   :  { %997 = vmatprep.subr.bf16.mxu1 %v2815_v25  ;;  %v2942_v24 = vld [vmem:[#allocation4 + $0x2a0] ss:$16 sps:$4 sm:$0xff]   ;;  %v2944_v25 = vld [vmem:[#allocation4 + $0x2a4] ss:$16 sps:$4 sm:$0xff]  }
  0x77   :  { %957 = vmatpush1.bf16.msra.mxu0 %v2810_v26  ;;  %v2902_v26 = vld [vmem:[#allocation4 + $0x24] ss:$16 sps:$4 sm:$0xff]  }
  0x78   :  { %998 = vmatpush1.bf16.msra.mxu1 %v2813_v27  ;;  %958 = vmatprep.subr.bf16.mxu0 %v2818_v28  ;;  %v2900_v27 = vld [vmem:[#allocation4 + $0x20] ss:$16 sps:$4 sm:$0xff]  }
  0x79   :  { %999 = vmatprep.subr.bf16.mxu1 %v2821_v29  ;;  %v2948_v28 = vld [vmem:[#allocation4 + $0x280] ss:$16 sps:$4 sm:$0xff]   ;;  %v2950_v29 = vld [vmem:[#allocation4 + $0x284] ss:$16 sps:$4 sm:$0xff]  }
  0x7b   :  { %959 = vmatpush1.bf16.msra.mxu0 %v2816_v30  ;;  %v2905_v30 = vld [vmem:[#allocation4 + $0x4] ss:$16 sps:$4 sm:$0xff]  }
  0x7c   :  { %1000 = vmatpush1.bf16.msra.mxu1 %v2819_v31  ;;  %960 = vmatprep.subr.bf16.mxu0 %v2824_v32  ;;  %v2903_v31 = vld [vmem:[#allocation4] ss:$16 sps:$4 sm:$0xff]  }
  0x7d   :  { %1001 = vmatprep.subr.bf16.mxu1 %v2827_v33  ;;  %v2954_v32 = vld [vmem:[#allocation4 + $0x260] ss:$16 sps:$4 sm:$0xff]   ;;  %v2956_v33 = vld [vmem:[#allocation4 + $0x264] ss:$16 sps:$4 sm:$0xff]  }
  0x7f   :  { %961 = vmatpush1.bf16.msra.mxu0 %v2822_v34  ;;  %v2908_v34 = vld [vmem:[#allocation4 + $0x1e4] ss:$16 sps:$4 sm:$0xff]  }
  0x80   :  { %1002 = vmatpush1.bf16.msra.mxu1 %v2825_v35  ;;  %962 = vmatprep.subr.bf16.mxu0 %v2830_v36  ;;  %v2906_v35 = vld [vmem:[#allocation4 + $0x1e0] ss:$16 sps:$4 sm:$0xff]  }
  0x81   :  { %1003 = vmatprep.subr.bf16.mxu1 %v2833_v37  ;;  %v2960_v36 = vld [vmem:[#allocation4 + $0x240] ss:$16 sps:$4 sm:$0xff]   ;;  %v2962_v37 = vld [vmem:[#allocation4 + $0x244] ss:$16 sps:$4 sm:$0xff]  }
  0x83   :  { %963 = vmatpush1.bf16.msra.mxu0 %v2828_v38  ;;  %v2911_v38 = vld [vmem:[#allocation4 + $0x1c4] ss:$16 sps:$4 sm:$0xff]  }
  0x84   :  { %1004 = vmatpush1.bf16.msra.mxu1 %v2831_v39  ;;  %964 = vmatprep.subr.bf16.mxu0 %v2836_v40  ;;  %v2909_v39 = vld [vmem:[#allocation4 + $0x1c0] ss:$16 sps:$4 sm:$0xff]  }
  0x85   :  { %1005 = vmatprep.subr.bf16.mxu1 %v2839_v41  ;;  %v2966_v40 = vld [vmem:[#allocation4 + $0x220] ss:$16 sps:$4 sm:$0xff]   ;;  %v2968_v41 = vld [vmem:[#allocation4 + $0x224] ss:$16 sps:$4 sm:$0xff]  }
  0x87   :  { %965 = vmatpush2.bf16.msra.mxu0 %v2834_v42  ;;  %v2914_v42 = vld [vmem:[#allocation4 + $0x1a4] ss:$16 sps:$4 sm:$0xff]  }
  0x88   :  { %1006 = vmatpush2.bf16.msra.mxu1 %v2837_v43  ;;  %966 = vmatprep.subr.bf16.mxu0 %v2842_v44  ;;  %v2912_v43 = vld [vmem:[#allocation4 + $0x1a0] ss:$16 sps:$4 sm:$0xff]  }
  0x89   :  { %1007 = vmatprep.subr.bf16.mxu1 %v2845_v45  ;;  %v2972_v44 = vld [vmem:[#allocation4 + $0x200] ss:$16 sps:$4 sm:$0xff]   ;;  %v2974_v45 = vld [vmem:[#allocation4 + $0x204] ss:$16 sps:$4 sm:$0xff]  }
  0x8b   :  { %967 = vmatpush2.bf16.msra.mxu0 %v2840_v46  ;;  %v2917_v46 = vld [vmem:[#allocation4 + $0x184] ss:$16 sps:$4 sm:$0xff]  }
  0x8c   :  { %1008 = vmatpush2.bf16.msra.mxu1 %v2843_v47  ;;  %968 = vmatprep.subr.bf16.mxu0 %v2848_v48  ;;  %v2915_v47 = vld [vmem:[#allocation4 + $0x180] ss:$16 sps:$4 sm:$0xff]  }
  0x8d   :  { %1009 = vmatprep.subr.bf16.mxu1 %v2851_v49  ;;  %v2978_v48 = vld [vmem:[#allocation4 + $0x3e0] ss:$16 sps:$4 sm:$0xff]   ;;  %v2980_v49 = vld [vmem:[#allocation4 + $0x3e4] ss:$16 sps:$4 sm:$0xff]  }
  0x8f   :  { %969 = vmatpush2.bf16.msra.mxu0 %v2846_v50  ;;  %v2920_v50 = vld [vmem:[#allocation4 + $0x164] ss:$16 sps:$4 sm:$0xff]  }
  0x90   :  { %1010 = vmatpush2.bf16.msra.mxu1 %v2849_v51  ;;  %970 = vmatprep.subr.bf16.mxu0 %v2854_v52  ;;  %v2918_v51 = vld [vmem:[#allocation4 + $0x160] ss:$16 sps:$4 sm:$0xff]  }
  0x91   :  { %1011 = vmatprep.subr.bf16.mxu1 %v2857_v53  ;;  %v2984_v52 = vld [vmem:[#allocation4 + $0x3c0] ss:$16 sps:$4 sm:$0xff]   ;;  %v2986_v53 = vld [vmem:[#allocation4 + $0x3c4] ss:$16 sps:$4 sm:$0xff]  }
  0x93   :  { %971 = vmatpush2.bf16.msra.mxu0 %v2852_v54  ;;  %v2923_v54 = vld [vmem:[#allocation4 + $0x144] ss:$16 sps:$4 sm:$0xff]  }
  0x94   :  { %1012 = vmatpush2.bf16.msra.mxu1 %v2855_v55  ;;  %972 = vmatprep.subr.bf16.mxu0 %v2860_v56  ;;  %v2921_v55 = vld [vmem:[#allocation4 + $0x140] ss:$16 sps:$4 sm:$0xff]  }
  0x95   :  { %1013 = vmatprep.subr.bf16.mxu1 %v2863_v57  ;;  %v2990_v56 = vld [vmem:[#allocation4 + $0x3a0] ss:$16 sps:$4 sm:$0xff]   ;;  %v2992_v57 = vld [vmem:[#allocation4 + $0x3a4] ss:$16 sps:$4 sm:$0xff]  }
  0x97   :  { %973 = vmatpush2.bf16.msra.mxu0 %v2858_v58  ;;  %v2926_v58 = vld [vmem:[#allocation4 + $0x124] ss:$16 sps:$4 sm:$0xff]  }
  0x98   :  { %1014 = vmatpush2.bf16.msra.mxu1 %v2861_v59  ;;  %974 = vmatprep.subr.bf16.mxu0 %v2866_v60  ;;  %v2924_v59 = vld [vmem:[#allocation4 + $0x120] ss:$16 sps:$4 sm:$0xff]  }
  0x99   :  { %1015 = vmatprep.subr.bf16.mxu1 %v2869_v61  ;;  %v2996_v60 = vld [vmem:[#allocation4 + $0x380] ss:$16 sps:$4 sm:$0xff]   ;;  %v2998_v61 = vld [vmem:[#allocation4 + $0x384] ss:$16 sps:$4 sm:$0xff]  }
  0x9b   :  { %975 = vmatpush2.bf16.msra.mxu0 %v2864_v62  ;;  %v2929_v62 = vld [vmem:[#allocation4 + $0x104] ss:$16 sps:$4 sm:$0xff]  }
  0x9c   :  { %1016 = vmatpush2.bf16.msra.mxu1 %v2867_v63  ;;  %976 = vmatprep.subr.bf16.mxu0 %v2872_v0  ;;  %v2927_v63 = vld [vmem:[#allocation4 + $0x100] ss:$16 sps:$4 sm:$0xff]  }
  0x9d   :  { %1017 = vmatprep.subr.bf16.mxu1 %v2875_v1  ;;  %v3002_v0 = vld [vmem:[#allocation4 + $0x360] ss:$16 sps:$4 sm:$0xff]   ;;  %v3004_v1 = vld [vmem:[#allocation4 + $0x364] ss:$16 sps:$4 sm:$0xff]  }
  0x9f   :  { %977 = vmatpush2.bf16.msra.mxu0 %v2870_v2  ;;  %v2935_v2 = vld [vmem:[#allocation4 + $0xec] ss:$16 sps:$4 sm:$0xff]  }
  0xa0   :  { %1018 = vmatpush2.bf16.msra.mxu1 %v2873_v3  ;;  %978 = vmatprep.subr.bf16.mxu0 %v2878_v4  ;;  %v3008_v3 = vld [vmem:[#allocation4 + $0x340] ss:$16 sps:$4 sm:$0xff]   ;;  %v3010_v4 = vld [vmem:[#allocation4 + $0x344] ss:$16 sps:$4 sm:$0xff]  }
  0xa1   :  { %1019 = vmatprep.subr.bf16.mxu1 %v2881_v5  ;;  %v3016_v5 = vld [vmem:[#allocation4 + $0x324] ss:$16 sps:$4 sm:$0xff]  }
  0xa3   :  { %979 = vmatpush2.bf16.msra.mxu0 %v2876_v6  ;;  %v3014_v6 = vld [vmem:[#allocation4 + $0x320] ss:$16 sps:$4 sm:$0xff]  }
  0xa4   :  { %1020 = vmatpush2.bf16.msra.mxu1 %v2879_v7  ;;  %1828 = vmatprep.subr.bf16.mxu0 %v2884_v10  ;;  %v3022_v7 = vld [vmem:[#allocation4 + $0x304] ss:$16 sps:$4 sm:$0xff]   ;;  %v3020_v10 = vld [vmem:[#allocation4 + $0x300] ss:$16 sps:$4 sm:$0xff]  }
  0xa5   :  { %1869 = vmatprep.subr.bf16.mxu1 %v2932_v18 }
  0xa6   :  { %981 = vmatmul.mubr.bf16.vlgmr.msra.gmra.mxu0 %v3241_v8  ;;  %v2894_v8 = vld [vmem:[#allocation4 + $0x60] ss:$16 sps:$4 sm:$0xff]  }
  0xa7   :  { %1022 = vmatmul.mubr.bf16.vlgmr.msra.gmra.mxu1 %v3243_v9  ;;  %1829 = vmatpush1.bf16.msra.mxu0 %v2882_v11  ;;  %v2938_v9 = vld [vmem:[#allocation4 + $0x2c4] ss:$16 sps:$4 sm:$0xff]   ;;  %v3028_v11 = vld [vmem:[#allocation4 + $0x2ec] ss:$16 sps:$4 sm:$0xff]  }
  0xa8   :  { %1830 = vmatprep.subr.bf16.mxu0 %v2887_v12  ;;  %1870 = vmatpush1.bf16.msra.mxu1 %v2930_v20  ;;  %v206_v12 = vlaneseq }
  0xa9   :  { %1871 = vmatprep.subr.bf16.mxu1 %v2938_v9 }
  0xab   :  { %1831 = vmatpush1.bf16.msra.mxu0 %v2885_v13  ;;  %v3250_v13 = vshrl.u32 %v206_v12, 7 }
  0xac   :  { %1832 = vmatprep.subr.bf16.mxu0 %v2890_v14  ;;  %1872 = vmatpush1.bf16.msra.mxu1 %v2936_v21 }
  0xad   :  { %1873 = vmatprep.subr.bf16.mxu1 %v2944_v25  ;;  %v208_v14 = vsub.s32 0, %v3250_v13 }
  0xaf   :  { %1833 = vmatpush1.bf16.msra.mxu0 %v2888_v15  ;;  %v3256_v15 = vld [vmem:[%s3300_s2] sm:$0xf] }
  0xb0   :  { %1834 = vmatprep.subr.bf16.mxu0 %v2893_v16  ;;  %1874 = vmatpush1.bf16.msra.mxu1 %v2942_v24  ;;  %v212_v16 = vsub.s32 1, %v3250_v13 }
  0xb1   :  { %1875 = vmatprep.subr.bf16.mxu1 %v2950_v29 }
  0xb2   :  { %v213_v18 = vrot.slane %v3256_v15, %v212_v16 }
  0xb3   :  { %1835 = vmatpush1.bf16.msra.mxu0 %v2891_v17  ;;  %v209_v17 = vrot.slane %v3256_v15, %v208_v14 }
  0xb4   :  { %1836 = vmatprep.subr.bf16.mxu0 %v2896_v19  ;;  %1876 = vmatpush1.bf16.msra.mxu1 %v2948_v28 }
  0xb5   :  { %1877 = vmatprep.subr.bf16.mxu1 %v2956_v33 }
  0xb7   :  { %1837 = vmatpush1.bf16.msra.mxu0 %v2894_v8 }
  0xb8   :  { %1838 = vmatprep.subr.bf16.mxu0 %v2899_v22  ;;  %1878 = vmatpush1.bf16.msra.mxu1 %v2954_v32  ;;  %v2933_v32 = vld [vmem:[#allocation4 + $0xe8] ss:$16 sps:$4 sm:$0xff]  }
  0xb9   :  { %1879 = vmatprep.subr.bf16.mxu1 %v2962_v37  ;;  %v2945_v37 = vld [vmem:[#allocation4 + $0xa8] ss:$16 sps:$4 sm:$0xff]  }
  0xbb   :  { %1839 = vmatpush1.bf16.msra.mxu0 %v2897_v23 }
  0xbc   :  { %1840 = vmatprep.subr.bf16.mxu0 %v2902_v26  ;;  %1880 = vmatpush1.bf16.msra.mxu1 %v2960_v36  ;;  %v2947_v36 = vld [vmem:[#allocation4 + $0xac] ss:$16 sps:$4 sm:$0xff]  }
  0xbd   :  { %1881 = vmatprep.subr.bf16.mxu1 %v2968_v41  ;;  %v2957_v41 = vld [vmem:[#allocation4 + $0x68] ss:$16 sps:$4 sm:$0xff]  }
  0xbf   :  { %1841 = vmatpush1.bf16.msra.mxu0 %v2900_v27 }
  0xc0   :  { %1842 = vmatprep.subr.bf16.mxu0 %v2905_v30  ;;  %1882 = vmatpush1.bf16.msra.mxu1 %v2966_v40  ;;  %v2959_v40 = vld [vmem:[#allocation4 + $0x6c] ss:$16 sps:$4 sm:$0xff]  }
  0xc1   :  { %1883 = vmatprep.subr.bf16.mxu1 %v2974_v45  ;;  %v2969_v45 = vld [vmem:[#allocation4 + $0x28] ss:$16 sps:$4 sm:$0xff]  }
  0xc3   :  { %1843 = vmatpush1.bf16.msra.mxu0 %v2903_v31 }
  0xc4   :  { %1844 = vmatprep.subr.bf16.mxu0 %v2908_v34  ;;  %1884 = vmatpush1.bf16.msra.mxu1 %v2972_v44  ;;  %v2941_v34 = vld [vmem:[#allocation4 + $0xcc] ss:$16 sps:$4 sm:$0xff]  }
  0xc5   :  { %1885 = vmatprep.subr.bf16.mxu1 %v2980_v49  ;;  %v2971_v44 = vld [vmem:[#allocation4 + $0x2c] ss:$16 sps:$4 sm:$0xff]   ;;  %v2981_v49 = vld [vmem:[#allocation4 + $0x1e8] ss:$16 sps:$4 sm:$0xff]  }
  0xc7   :  { %1845 = vmatpush2.bf16.msra.mxu0 %v2906_v35  ;;  %v2939_v35 = vld [vmem:[#allocation4 + $0xc8] ss:$16 sps:$4 sm:$0xff]  }
  0xc8   :  { %1846 = vmatprep.subr.bf16.mxu0 %v2911_v38  ;;  %1886 = vmatpush2.bf16.msra.mxu1 %v2978_v48  ;;  %v2953_v38 = vld [vmem:[#allocation4 + $0x8c] ss:$16 sps:$4 sm:$0xff]  }
  0xc9   :  { %1887 = vmatprep.subr.bf16.mxu1 %v2986_v53  ;;  %v2983_v48 = vld [vmem:[#allocation4 + $0x1ec] ss:$16 sps:$4 sm:$0xff]   ;;  %v2993_v53 = vld [vmem:[#allocation4 + $0x1a8] ss:$16 sps:$4 sm:$0xff]  }
  0xcb   :  { %1847 = vmatpush2.bf16.msra.mxu0 %v2909_v39  ;;  %v2951_v39 = vld [vmem:[#allocation4 + $0x88] ss:$16 sps:$4 sm:$0xff]  }
  0xcc   :  { %1848 = vmatprep.subr.bf16.mxu0 %v2914_v42  ;;  %1888 = vmatpush2.bf16.msra.mxu1 %v2984_v52  ;;  %v2965_v42 = vld [vmem:[#allocation4 + $0x4c] ss:$16 sps:$4 sm:$0xff]  }
  0xcd   :  { %1889 = vmatprep.subr.bf16.mxu1 %v2992_v57  ;;  %v2995_v52 = vld [vmem:[#allocation4 + $0x1ac] ss:$16 sps:$4 sm:$0xff]   ;;  %v3005_v57 = vld [vmem:[#allocation4 + $0x168] ss:$16 sps:$4 sm:$0xff]  }
  0xcf   :  { %1849 = vmatpush2.bf16.msra.mxu0 %v2912_v43  ;;  %v2963_v43 = vld [vmem:[#allocation4 + $0x48] ss:$16 sps:$4 sm:$0xff]  }
  0xd0   :  { %1850 = vmatprep.subr.bf16.mxu0 %v2917_v46  ;;  %1890 = vmatpush2.bf16.msra.mxu1 %v2990_v56  ;;  %v2977_v46 = vld [vmem:[#allocation4 + $0xc] ss:$16 sps:$4 sm:$0xff]  }
  0xd1   :  { %1891 = vmatprep.subr.bf16.mxu1 %v2998_v61  ;;  %v3007_v56 = vld [vmem:[#allocation4 + $0x16c] ss:$16 sps:$4 sm:$0xff]   ;;  %v3011_v61 = vld [vmem:[#allocation4 + $0x148] ss:$16 sps:$4 sm:$0xff]  }
  0xd3   :  { %1851 = vmatpush2.bf16.msra.mxu0 %v2915_v47  ;;  %v2975_v47 = vld [vmem:[#allocation4 + $0x8] ss:$16 sps:$4 sm:$0xff]  }
  0xd4   :  { %1852 = vmatprep.subr.bf16.mxu0 %v2920_v50  ;;  %1892 = vmatpush2.bf16.msra.mxu1 %v2996_v60  ;;  %v2989_v50 = vld [vmem:[#allocation4 + $0x1cc] ss:$16 sps:$4 sm:$0xff]   ;;  %v220_v60 = vsub.s32 3, %v3250_v13 }
  0xd5   :  { %1893 = vmatprep.subr.bf16.mxu1 %v3004_v1 }
  0xd7   :  { %1853 = vmatpush2.bf16.msra.mxu0 %v2918_v51  ;;  %v2987_v51 = vld [vmem:[#allocation4 + $0x1c8] ss:$16 sps:$4 sm:$0xff]  }
  0xd8   :  { %1854 = vmatprep.subr.bf16.mxu0 %v2923_v54  ;;  %1894 = vmatpush2.bf16.msra.mxu1 %v3002_v0  ;;  %v3001_v54 = vld [vmem:[#allocation4 + $0x18c] ss:$16 sps:$4 sm:$0xff]   ;;  %v221_v0 = vrot.slane %v3256_v15, %v220_v60 }
  0xd9   :  { %1895 = vmatprep.subr.bf16.mxu1 %v3010_v4  ;;  %v3017_v4 = vld [vmem:[#allocation4 + $0x128] ss:$16 sps:$4 sm:$0xff]  }
  0xdb   :  { %1855 = vmatpush2.bf16.msra.mxu0 %v2921_v55  ;;  %v2999_v55 = vld [vmem:[#allocation4 + $0x188] ss:$16 sps:$4 sm:$0xff]  }
  0xdc   :  { %1856 = vmatprep.subr.bf16.mxu0 %v2926_v58  ;;  %1896 = vmatpush2.bf16.msra.mxu1 %v3008_v3  ;;  %v216_v58 = vsub.s32 2, %v3250_v13 }
  0xdd   :  { %1897 = vmatprep.subr.bf16.mxu1 %v3016_v5 }
  0xdf   :  { %1857 = vmatpush2.bf16.msra.mxu0 %v2924_v59  ;;  %v3013_v59 = vld [vmem:[#allocation4 + $0x14c] ss:$16 sps:$4 sm:$0xff]  }
  0xe0   :  { %1858 = vmatprep.subr.bf16.mxu0 %v2929_v62  ;;  %1898 = vmatpush2.bf16.msra.mxu1 %v3014_v6  ;;  %v217_v62 = vrot.slane %v3256_v15, %v216_v58 }
  0xe1   :  { %1899 = vmatprep.subr.bf16.mxu1 %v3022_v7  ;;  %v3025_v7 = vld [vmem:[#allocation4 + $0x10c] ss:$16 sps:$4 sm:$0xff]  }
  0xe3   :  { %1859 = vmatpush2.bf16.msra.mxu0 %v2927_v63  ;;  %v3019_v63 = vld [vmem:[#allocation4 + $0x12c] ss:$16 sps:$4 sm:$0xff]  }
  0xe4   :  { %1910 = vmatprep.subr.bf16.mxu0 %v2935_v2  ;;  %1900 = vmatpush2.bf16.msra.mxu1 %v3020_v10 }
  0xe5   :  { %1951 = vmatprep.subr.bf16.mxu1 %v3028_v11 }
 0x126   :  { %v900_v19 = vpop.f32.mrf.mxu0 }
 0x127   :  { %v941_v20 = vpop.f32.mrf.mxu1  ;;  %v901_v8 = vadd.f32 %v900_v19, %v209_v17  ;;  %v3023_v19 = vld [vmem:[#allocation4 + $0x108] ss:$16 sps:$4 sm:$0xff]  }
 0x128   :  { %v902_v21 = vpop.f32.mrf.mxu0 }
 0x129   :  { %v943_v9 = vpop.f32.mrf.mxu1  ;;  %v942_v22 = vadd.f32 %v941_v20, %v901_v8  ;;  %v903_v23 = vadd.f32 %v902_v21, %v213_v18 }
 0x12a   :  { %v904_v24 = vpop.f32.mrf.mxu0 }
 0x12b   :  { %v945_v25 = vpop.f32.mrf.mxu1  ;;  %v944_v26 = vadd.f32 %v943_v9, %v903_v23  ;;  %v1030_v27 = vmax.f32 %v942_v22, 0.0  ;;  %v3026_v22 = vld [vmem:[#allocation4 + $0x2e8] ss:$16 sps:$4 sm:$0xff]   ;;  %v3031_v24 = vld [vmem:[#allocation4 + $0x2cc] ss:$16 sps:$4 sm:$0xff]  }
 0x12c   :  { %v905_v28 = vpop.f32.mrf.mxu0  ;;  %v3029_v25 = vld [vmem:[#allocation4 + $0x2c8] ss:$16 sps:$4 sm:$0xff]  }
 0x12d   :  { %v946_v29 = vpop.f32.mrf.mxu1  ;;  %v1031_v30 = vmax.f32 %v944_v26, 0.0  ;;  %v3265_v33 = vpack.c.bf16 %v1030_v27, %v1030_v27  ;;  %v3034_v26 = vld [vmem:[#allocation4 + $0x2ac] ss:$16 sps:$4 sm:$0xff]   ;;  %v3032_v27 = vld [vmem:[#allocation4 + $0x2a8] ss:$16 sps:$4 sm:$0xff]  }
 0x12e   :  { %v3037_v28 = vld [vmem:[#allocation4 + $0x28c] ss:$16 sps:$4 sm:$0xff]  }
 0x12f   :  { %v1035_v31 = vpack.c.bf16 %v1031_v30, %v1031_v30  ;;  %v3074_v29 = vld [vmem:[#allocation6 + $0x78] sm:$0xff]  }
 0x130   :  { %v3075_v30 = vld [vmem:[#allocation6 + $0x38] sm:$0xff]  }
 0x131   :  { %1860 = vmatprep.mubr.bf16.mxu0 %v1035_v31 }
 0x132   :  { %1861 = vmatmul.mubr.bf16.vlgmr.msra.gmra.mxu0 %v3265_v33 }
 0x133   :  { %1911 = vmatpush1.bf16.msra.mxu0 %v2933_v32  ;;  %1942 = vmatprep.mubr.bf16.mxu0 %v1035_v31  ;;  %v3076_v31 = vld [vmem:[#allocation6 + $0x70] sm:$0xff]   ;;  %v3035_v32 = vld [vmem:[#allocation4 + $0x288] ss:$16 sps:$4 sm:$0xff]  }
 0x134   :  { %1912 = vmatprep.subr.bf16.mxu0 %v2941_v34  ;;  %v3077_v34 = vld [vmem:[#allocation6 + $0x30] sm:$0xff]  }
 0x137   :  { %1913 = vmatpush1.bf16.msra.mxu0 %v2939_v35  ;;  %v3078_v35 = vld [vmem:[#allocation6 + $0x68] sm:$0xff]  }
 0x138   :  { %1914 = vmatprep.subr.bf16.mxu0 %v2947_v36  ;;  %v3038_v36 = vld [vmem:[#allocation4 + $0x268] ss:$16 sps:$4 sm:$0xff]  }
 0x13b   :  { %1915 = vmatpush1.bf16.msra.mxu0 %v2945_v37  ;;  %v3079_v37 = vld [vmem:[#allocation6 + $0x28] sm:$0xff]  }
 0x13c   :  { %1916 = vmatprep.subr.bf16.mxu0 %v2953_v38  ;;  %v3043_v38 = vld [vmem:[#allocation4 + $0x24c] ss:$16 sps:$4 sm:$0xff]  }
 0x13f   :  { %1917 = vmatpush1.bf16.msra.mxu0 %v2951_v39  ;;  %v3080_v39 = vld [vmem:[#allocation6 + $0x60] sm:$0xff]  }
 0x140   :  { %1918 = vmatprep.subr.bf16.mxu0 %v2959_v40  ;;  %v3041_v40 = vld [vmem:[#allocation4 + $0x248] ss:$16 sps:$4 sm:$0xff]  }
 0x143   :  { %1919 = vmatpush1.bf16.msra.mxu0 %v2957_v41  ;;  %v3081_v41 = vld [vmem:[#allocation6 + $0x20] sm:$0xff]  }
 0x144   :  { %1920 = vmatprep.subr.bf16.mxu0 %v2965_v42  ;;  %v3046_v42 = vld [vmem:[#allocation4 + $0x22c] ss:$16 sps:$4 sm:$0xff]  }
 0x147   :  { %1921 = vmatpush1.bf16.msra.mxu0 %v2963_v43  ;;  %v3082_v43 = vld [vmem:[#allocation6 + $0x58] sm:$0xff]  }
 0x148   :  { %1922 = vmatprep.subr.bf16.mxu0 %v2971_v44  ;;  %v3044_v44 = vld [vmem:[#allocation4 + $0x228] ss:$16 sps:$4 sm:$0xff]  }
 0x14b   :  { %1923 = vmatpush1.bf16.msra.mxu0 %v2969_v45  ;;  %v3083_v45 = vld [vmem:[#allocation6 + $0x18] sm:$0xff]  }
 0x14c   :  { %1924 = vmatprep.subr.bf16.mxu0 %v2977_v46  ;;  %v3049_v46 = vld [vmem:[#allocation4 + $0x20c] ss:$16 sps:$4 sm:$0xff]  }
 0x14f   :  { %1925 = vmatpush1.bf16.msra.mxu0 %v2975_v47  ;;  %v3084_v47 = vld [vmem:[#allocation6 + $0x50] sm:$0xff]  }
 0x150   :  { %1926 = vmatprep.subr.bf16.mxu0 %v2983_v48  ;;  %v3047_v48 = vld [vmem:[#allocation4 + $0x208] ss:$16 sps:$4 sm:$0xff]  }
 0x153   :  { %1927 = vmatpush2.bf16.msra.mxu0 %v2981_v49  ;;  %v3052_v49 = vld [vmem:[#allocation4 + $0x3ec] ss:$16 sps:$4 sm:$0xff]  }
 0x154   :  { %1928 = vmatprep.subr.bf16.mxu0 %v2989_v50  ;;  %v3050_v50 = vld [vmem:[#allocation4 + $0x3e8] ss:$16 sps:$4 sm:$0xff]  }
 0x157   :  { %1929 = vmatpush2.bf16.msra.mxu0 %v2987_v51  ;;  %v3055_v51 = vld [vmem:[#allocation4 + $0x3cc] ss:$16 sps:$4 sm:$0xff]  }
 0x158   :  { %1930 = vmatprep.subr.bf16.mxu0 %v2995_v52  ;;  %v3053_v52 = vld [vmem:[#allocation4 + $0x3c8] ss:$16 sps:$4 sm:$0xff]  }
 0x15b   :  { %1931 = vmatpush2.bf16.msra.mxu0 %v2993_v53  ;;  %v3058_v53 = vld [vmem:[#allocation4 + $0x3ac] ss:$16 sps:$4 sm:$0xff]  }
 0x15c   :  { %1932 = vmatprep.subr.bf16.mxu0 %v3001_v54  ;;  %v3056_v54 = vld [vmem:[#allocation4 + $0x3a8] ss:$16 sps:$4 sm:$0xff]  }
 0x15f   :  { %1933 = vmatpush2.bf16.msra.mxu0 %v2999_v55  ;;  %v3061_v55 = vld [vmem:[#allocation4 + $0x38c] ss:$16 sps:$4 sm:$0xff]  }
 0x160   :  { %1934 = vmatprep.subr.bf16.mxu0 %v3007_v56  ;;  %v3059_v56 = vld [vmem:[#allocation4 + $0x388] ss:$16 sps:$4 sm:$0xff]  }
 0x163   :  { %1935 = vmatpush2.bf16.msra.mxu0 %v3005_v57  ;;  %v3064_v57 = vld [vmem:[#allocation4 + $0x36c] ss:$16 sps:$4 sm:$0xff]  }
 0x164   :  { %1936 = vmatprep.subr.bf16.mxu0 %v3013_v59  ;;  %v3062_v59 = vld [vmem:[#allocation4 + $0x368] ss:$16 sps:$4 sm:$0xff]  }
 0x166   :  { %v982_v1 = vpop.f32.mrf.mxu0 }
 0x167   :  { %v1023_v2 = vpop.f32.mrf.mxu1  ;;  %v983_v3 = vadd.f32 %v982_v1, %v217_v62  ;;  %1937 = vmatpush2.bf16.msra.mxu0 %v3011_v61  ;;  %v3067_v61 = vld [vmem:[#allocation4 + $0x34c] ss:$16 sps:$4 sm:$0xff]   ;;  %v3065_v62 = vld [vmem:[#allocation4 + $0x348] ss:$16 sps:$4 sm:$0xff]  }
 0x168   :  { %v984_v5 = vpop.f32.mrf.mxu0  ;;  %1938 = vmatprep.subr.bf16.mxu0 %v3019_v63  ;;  %v3070_v63 = vld [vmem:[#allocation4 + $0x32c] ss:$16 sps:$4 sm:$0xff]  }
 0x169   :  { %v1025_v6 = vpop.f32.mrf.mxu1  ;;  %v1024_v10 = vadd.f32 %v1023_v2, %v983_v3  ;;  %v985_v11 = vadd.f32 %v984_v5, %v221_v0  ;;  %v3068_v0 = vld [vmem:[#allocation4 + $0x328] ss:$16 sps:$4 sm:$0xff]   ;;  %v3073_v1 = vld [vmem:[#allocation4 + $0x30c] ss:$16 sps:$4 sm:$0xff]   ;;  %v3085_v3 = vld [vmem:[#allocation6 + $0x10] sm:$0xff]  }
 0x16a   :  { %v986_v12 = vpop.f32.mrf.mxu0  ;;  %v3071_v2 = vld [vmem:[#allocation4 + $0x308] ss:$16 sps:$4 sm:$0xff]  }
 0x16b   :  { %v1027_v17 = vpop.f32.mrf.mxu1  ;;  %v1026_v18 = vadd.f32 %v1025_v6, %v985_v11  ;;  %1939 = vmatpush2.bf16.msra.mxu0 %v3017_v4  ;;  %v1032_v20 = vmax.f32 %v1024_v10, 0.0  ;;  %v3086_v4 = vld [vmem:[#allocation6 + $0x48] sm:$0xff]   ;;  %v3088_v6 = vld [vmem:[#allocation6 + $0x40] sm:$0xff]   ;;  %v3090_v10 = vld [vmem:[#allocation6 + $0xf8] sm:$0xff]  }
 0x16c   :  { %v987_v8 = vpop.f32.mrf.mxu0  ;;  %1940 = vmatprep.subr.bf16.mxu0 %v3025_v7  ;;  %v3087_v5 = vld [vmem:[#allocation6 + $0x8] sm:$0xff]   ;;  %v3089_v7 = vld [vmem:[#allocation6] sm:$0xff]   ;;  %v3091_v11 = vld [vmem:[#allocation6 + $0xb8] sm:$0xff]  }
 0x16d   :  { %v1028_v21 = vpop.f32.mrf.mxu1  ;;  %v1033_v15 = vmax.f32 %v1026_v18, 0.0  ;;  %v3276_v23 = vpack.c.bf16 %v1032_v20, %v1032_v20  ;;  %v3092_v12 = vld [vmem:[#allocation6 + $0xf0] sm:$0xff]   ;;  %v3094_v18 = vld [vmem:[#allocation6 + $0xe8] sm:$0xff]   ;;  %v3096_v20 = vld [vmem:[#allocation6 + $0xe0] sm:$0xff]  }
 0x16e   :  { %v3093_v17 = vld [vmem:[#allocation6 + $0xb0] sm:$0xff]   ;;  %v3097_v8 = vld [vmem:[#allocation6 + $0xa0] sm:$0xff]   ;;  %v3098_v21 = vld [vmem:[#allocation6 + $0xd8] sm:$0xff]  }
 0x16f   :  { %v1037_v9 = vpack.c.bf16 %v1033_v15, %v1033_v15  ;;  %1941 = vmatpush2.bf16.msra.mxu0 %v3023_v19  ;;  %v3095_v19 = vld [vmem:[#allocation6 + $0xa8] sm:$0xff]   ;;  %v3099_v15 = vld [vmem:[#allocation6 + $0x98] sm:$0xff]  }
 0x170   :  { %2639 = vmatprep.subr.bf16.mxu0 %v3074_v29  ;;  %v3105_v29 = vld [vmem:[#allocation6 + $0x80] sm:$0xff]  }
 0x171   :  { %1901 = vmatprep.mubr.bf16.mxu1 %v1037_v9 }
 0x172   :  { %1943 = vmatmul.mubr.bf16.vlgmr.msra.gmra.mxu0 %v3265_v33  ;;  %1902 = vmatmul.mubr.bf16.vlgmr.msra.gmra.mxu1 %v3276_v23  ;;  %v3040_v33 = vld [vmem:[#allocation4 + $0x26c] ss:$16 sps:$4 sm:$0xff]  }
 0x173   :  { %1952 = vmatpush1.bf16.msra.mxu1 %v3026_v22  ;;  %1983 = vmatprep.mubr.bf16.mxu1 %v1037_v9  ;;  %v3100_v9 = vld [vmem:[#allocation6 + $0xd0] sm:$0xff]  }
 0x174   :  { %1953 = vmatprep.subr.bf16.mxu1 %v3031_v24  ;;  %2640 = vmatpush3.bf16.msra.mxu0 %v3075_v30  ;;  %v3101_v22 = vld [vmem:[#allocation6 + $0x90] sm:$0xff]   ;;  %v3102_v24 = vld [vmem:[#allocation6 + $0xc8] sm:$0xff]  }
 0x175   :  { %2641 = vmatprep.subr.bf16.mxu0 %v3076_v31  ;;  %v1166_v31 = vld [vmem:[%s3302_s4] sm:$0xf] }
 0x177   :  { %1954 = vmatpush1.bf16.msra.mxu1 %v3029_v25  ;;  %v3103_v25 = vld [vmem:[#allocation6 + $0x88] sm:$0xff]  }
 0x178   :  { %1955 = vmatprep.subr.bf16.mxu1 %v3034_v26  ;;  %2642 = vmatpush3.bf16.msra.mxu0 %v3077_v34  ;;  %v1175_v34 = vrot.slane %v1166_v31, %v212_v16  ;;  %v1183_v16 = vrot.slane %v1166_v31, %v220_v60  ;;  %v2606_v60 = vld [vmem:[%s3304_s6] ss:$0 sm:$0xff] }
 0x179   :  { %2643 = vmatprep.subr.bf16.mxu0 %v3078_v35 }
 0x17b   :  { %1956 = vmatpush1.bf16.msra.mxu1 %v3032_v27 }
 0x17c   :  { %1957 = vmatprep.subr.bf16.mxu1 %v3037_v28  ;;  %2644 = vmatpush3.bf16.msra.mxu0 %v3079_v37  ;;  %v3104_v28 = vld [vmem:[#allocation6 + $0xc0] sm:$0xff]  }
 0x17d   :  { %2645 = vmatprep.subr.bf16.mxu0 %v3080_v39 }
 0x17f   :  { %1958 = vmatpush1.bf16.msra.mxu1 %v3035_v32  ;;  %v1171_v32 = vrot.slane %v1166_v31, %v208_v14  ;;  %v1179_v14 = vrot.slane %v1166_v31, %v216_v58 }
 0x180   :  { %1959 = vmatprep.subr.bf16.mxu1 %v3040_v33  ;;  %2646 = vmatpush3.bf16.msra.mxu0 %v3081_v41 }
 0x181   :  { %2647 = vmatprep.subr.bf16.mxu0 %v3082_v43 }
 0x183   :  { %1960 = vmatpush1.bf16.msra.mxu1 %v3038_v36 }
 0x184   :  { %1961 = vmatprep.subr.bf16.mxu1 %v3043_v38  ;;  %2648 = vmatpush3.bf16.msra.mxu0 %v3083_v45 }
 0x185   :  { %2649 = vmatprep.subr.bf16.mxu0 %v3084_v47 }
 0x187   :  { %1962 = vmatpush1.bf16.msra.mxu1 %v3041_v40 }
 0x188   :  { %1963 = vmatprep.subr.bf16.mxu1 %v3046_v42  ;;  %2650 = vmatpush3.bf16.msra.mxu0 %v3085_v3 }
 0x189   :  { %2651 = vmatprep.subr.bf16.mxu0 %v3086_v4 }
 0x18b   :  { %1964 = vmatpush1.bf16.msra.mxu1 %v3044_v44 }
 0x18c   :  { %1965 = vmatprep.subr.bf16.mxu1 %v3049_v46  ;;  %2652 = vmatpush3.bf16.msra.mxu0 %v3087_v5 }
 0x18d   :  { %2653 = vmatprep.subr.bf16.mxu0 %v3088_v6 }
 0x18f   :  { %1966 = vmatpush1.bf16.msra.mxu1 %v3047_v48 }
 0x190   :  { %1967 = vmatprep.subr.bf16.mxu1 %v3052_v49  ;;  %2654 = vmatpush3.bf16.msra.mxu0 %v3089_v7 }
 0x193   :  { %1968 = vmatpush2.bf16.msra.mxu1 %v3050_v50 }
 0x194   :  { %1969 = vmatprep.subr.bf16.mxu1 %v3055_v51 }
 0x197   :  { %1970 = vmatpush2.bf16.msra.mxu1 %v3053_v52 }
 0x198   :  { %1971 = vmatprep.subr.bf16.mxu1 %v3058_v53 }
 0x19b   :  { %1972 = vmatpush2.bf16.msra.mxu1 %v3056_v54 }
 0x19c   :  { %1973 = vmatprep.subr.bf16.mxu1 %v3061_v55 }
 0x19f   :  { %1974 = vmatpush2.bf16.msra.mxu1 %v3059_v56 }
 0x1a0   :  { %1975 = vmatprep.subr.bf16.mxu1 %v3064_v57 }
 0x1a3   :  { %1976 = vmatpush2.bf16.msra.mxu1 %v3062_v59 }
 0x1a4   :  { %1977 = vmatprep.subr.bf16.mxu1 %v3067_v61 }
 0x1a7   :  { %1978 = vmatpush2.bf16.msra.mxu1 %v3065_v62 }
 0x1a8   :  { %1979 = vmatprep.subr.bf16.mxu1 %v3070_v63 }
 0x1ab   :  { %1980 = vmatpush2.bf16.msra.mxu1 %v3068_v0 }
 0x1ac   :  { %1981 = vmatprep.subr.bf16.mxu1 %v3073_v1 }
 0x1af   :  { %1982 = vmatpush2.bf16.msra.mxu1 %v3071_v2 }
 0x1b0   :  { %2661 = vmatprep.subr.bf16.mxu1 %v3090_v10 }
 0x1b2   :  { %1984 = vmatmul.mubr.bf16.vlgmr.msra.gmra.mxu1 %v3276_v23 }
 0x1b3   :  { %2662 = vmatpush3.bf16.msra.mxu1 %v3091_v11 }
 0x1b4   :  { %2663 = vmatprep.subr.bf16.mxu1 %v3092_v12 }
 0x1b7   :  { %2664 = vmatpush3.bf16.msra.mxu1 %v3093_v17 }
 0x1b8   :  { %2665 = vmatprep.subr.bf16.mxu1 %v3094_v18 }
 0x1bb   :  { %2666 = vmatpush3.bf16.msra.mxu1 %v3095_v19 }
 0x1bc   :  { %2667 = vmatprep.subr.bf16.mxu1 %v3096_v20 }
 0x1bf   :  { %2668 = vmatpush3.bf16.msra.mxu1 %v3097_v8 }
 0x1c0   :  { %2669 = vmatprep.subr.bf16.mxu1 %v3098_v21 }
 0x1c3   :  { %2670 = vmatpush3.bf16.msra.mxu1 %v3099_v15 }
 0x1c4   :  { %2671 = vmatprep.subr.bf16.mxu1 %v3100_v9 }
 0x1c7   :  { %2672 = vmatpush3.bf16.msra.mxu1 %v3101_v22 }
 0x1c8   :  { %2673 = vmatprep.subr.bf16.mxu1 %v3102_v24 }
 0x1cb   :  { %2674 = vmatpush3.bf16.msra.mxu1 %v3103_v25 }
 0x1cc   :  { %2675 = vmatprep.subr.bf16.mxu1 %v3104_v28 }
 0x1cf   :  { %2676 = vmatpush3.bf16.msra.mxu1 %v3105_v29 }
 0x1f2   :  { %v1862_v23 = vpop.f32.mrf.mxu0 }
 0x1f3   :  { %v1863_v33 = vadd.f32 %v1862_v23, %v1171_v32 }
 0x1f4   :  { %v1864_v26 = vpop.f32.mrf.mxu0 }
 0x1f5   :  { %v1865_v37 = vadd.f32 %v1864_v26, %v1175_v34 }
 0x1f6   :  { %v1866_v27 = vpop.f32.mrf.mxu0 }
 0x1f8   :  { %v1867_v30 = vpop.f32.mrf.mxu0 }
 0x232   :  { %v1944_v35 = vpop.f32.mrf.mxu0  ;;  %v1903_v36 = vpop.f32.mrf.mxu1 }
 0x233   :  { %v1904_v38 = vadd.f32 %v1903_v36, %v1863_v33  ;;  %v1945_v50 = vadd.f32 %v1944_v35, %v1179_v14 }
 0x234   :  { %v1946_v39 = vpop.f32.mrf.mxu0  ;;  %v1905_v40 = vpop.f32.mrf.mxu1 }
 0x235   :  { %v1906_v41 = vadd.f32 %v1905_v40, %v1865_v37  ;;  %v1992_v42 = vmax.f32 %v1904_v38, 0.0  ;;  %v1947_v52 = vadd.f32 %v1946_v39, %v1183_v16 }
 0x236   :  { %v1948_v43 = vpop.f32.mrf.mxu0  ;;  %v1907_v44 = vpop.f32.mrf.mxu1 }
 0x237   :  { %v1993_v45 = vmax.f32 %v1906_v41, 0.0  ;;  %v1996_v49 = vpack.c.bf16 %v1992_v42, %v1992_v42 }
 0x238   :  { %v1949_v46 = vpop.f32.mrf.mxu0  ;;  %v1908_v47 = vpop.f32.mrf.mxu1 }
 0x239   :  { %v1997_v48 = vpack.c.bf16 %v1993_v45, %v1993_v45 }
 0x23b   :  { %2295 = vmatprep.mubr.bf16.mxu0 %v1997_v48 }
 0x23c   :  { %2296 = vmatmul.mubr.bf16.vlgmr.msra.gmra.mxu0 %v1996_v49 }
 0x272   :  { %v1985_v51 = vpop.f32.mrf.mxu1 }
 0x273   :  { %v1986_v53 = vadd.f32 %v1985_v51, %v1945_v50 }
 0x274   :  { %v1987_v54 = vpop.f32.mrf.mxu1 }
 0x275   :  { %v1988_v55 = vadd.f32 %v1987_v54, %v1947_v52  ;;  %v1994_v56 = vmax.f32 %v1986_v53, 0.0 }
 0x276   :  { %v1989_v57 = vpop.f32.mrf.mxu1 }
 0x277   :  { %v1995_v59 = vmax.f32 %v1988_v55, 0.0  ;;  %v1998_v63 = vpack.c.bf16 %v1994_v56, %v1994_v56 }
 0x278   :  { %v1990_v61 = vpop.f32.mrf.mxu1 }
 0x279   :  { %v1999_v62 = vpack.c.bf16 %v1995_v59, %v1995_v59 }
 0x27b   :  { %2335 = vmatprep.mubr.bf16.mxu1 %v1999_v62 }
 0x27c   :  { %2336 = vmatmul.mubr.bf16.vlgmr.msra.gmra.mxu1 %v1998_v63 }
 0x2fc   :  { %v2655_v0 = vpop.f32.mrf.mxu0 }
 0x2fe   :  { %v2656_v1 = vpop.f32.mrf.mxu0 }
 0x2ff   :  { %v2657_v13 = vadd.f32 %v2656_v1, %v2655_v0 }
 0x300   :  { %v2658_v58 = vpop.f32.mrf.mxu0 }
 0x301   :  { %v2298_v5 = vadd.f32 %v2657_v13, %v2606_v60 }
 0x302   :  { %v2659_v2 = vpop.f32.mrf.mxu0 }
 0x33c   :  { %v2677_v3 = vpop.f32.mrf.mxu1 }
 0x33e   :  { %v2678_v4 = vpop.f32.mrf.mxu1 }
 0x33f   :  { %v2679_v6 = vadd.f32 %v2678_v4, %v2677_v3 }
 0x340   :  { %v2680_v7 = vpop.f32.mrf.mxu1 }
 0x341   :  { %v2338_v10 = vadd.f32 %v2679_v6, %v2298_v5 }
 0x342   :  { %v2681_v11 = vpop.f32.mrf.mxu1 }
 0x343   :  { %2343 = vst [vmem:[%s3305_s7] sm:$0xff] %v2338_v10 }
 0x344   :  { %2348 = vsyncpa [#allocation3], 1 }
 0x345   :  { %2349 = vsyncpa [#allocation5], 1 }

</bundles_post_ra>
